<compile_context>
chip_gen: v6e
topology: v6e:2x2x1
jax: 0.10.0
libtpu: 0.0.40
codegen_flags: <defaults>
</compile_context>

<pallas_src>
import jax
import jax.numpy as jnp
from jax.experimental import pallas as pl
from jax.experimental.pallas import tpu as pltpu

_BLOCK_ROWS = 8  # sublane-sized group of lookups per grid step


def _gather_add_kernel(idx_ref, syn0_hbm, syn1_hbm, out_ref, s0, s1, sems):
    """out_block[r, :] = syn0[idx[base+r], :] + syn1[idx[base+r], :]

    idx_ref : SMEM (N,)  int32        (scalar prefetch)
    syn0_hbm: HBM  (V, D)             (memory_space=pl.ANY, manual DMA gather)
    syn1_hbm: HBM  (V, D)
    out_ref : VMEM (8, D)             (auto-pipelined output block)
    s0, s1  : VMEM (8, D) scratch
    sems    : DMA semaphores (2, 8)
    """
    nb = out_ref.shape[0]
    vocab = syn0_hbm.shape[0]
    base = pl.program_id(0) * nb

    # Issue all 2*nb row DMAs up-front so they are all in flight concurrently.
    copies = []
    for r in range(nb):
        row = idx_ref[base + r]
        row = jnp.minimum(jnp.maximum(row, 0), vocab - 1)  # clamp: no OOB DMA
        c0 = pltpu.make_async_copy(syn0_hbm.at[row], s0.at[r], sems.at[0, r])
        c1 = pltpu.make_async_copy(syn1_hbm.at[row], s1.at[r], sems.at[1, r])
        c0.start()
        c1.start()
        copies.append(c0)
        copies.append(c1)
    for c in copies:
        c.wait()

    # One sublane/lane-dense (8, D) add + store.
    out_ref[...] = s0[...] + s1[...]


def word2vec_get_embedding(idx, syn0, syn1):
    """Batched equivalent of Word2Vec.get_embedding: (syn0 + syn1)[idx]."""
    idx = idx.astype(jnp.int32)
    n = idx.shape[0]
    _, d = syn0.shape

    # Pad the batch to a multiple of the sublane group size (index 0 is the
    # padding row, matching padding_idx=0 semantics; padded rows are sliced off).
    n_pad = pl.cdiv(n, _BLOCK_ROWS) * _BLOCK_ROWS
    if n_pad != n:
        idx = jnp.pad(idx, (0, n_pad - n))

    out = pl.pallas_call(
        _gather_add_kernel,
        out_shape=jax.ShapeDtypeStruct((n_pad, d), syn0.dtype),
        grid_spec=pltpu.PrefetchScalarGridSpec(
            num_scalar_prefetch=1,
            grid=(n_pad // _BLOCK_ROWS,),
            in_specs=[
                pl.BlockSpec(memory_space=pl.ANY),  # syn0 stays in HBM
                pl.BlockSpec(memory_space=pl.ANY),  # syn1 stays in HBM
            ],
            out_specs=pl.BlockSpec((_BLOCK_ROWS, d), lambda i, idx_ref: (i, 0)),
            scratch_shapes=[
                pltpu.VMEM((_BLOCK_ROWS, d), syn0.dtype),
                pltpu.VMEM((_BLOCK_ROWS, d), syn1.dtype),
                pltpu.SemaphoreType.DMA((2, _BLOCK_ROWS)),
            ],
        ),
        compiler_params=pltpu.CompilerParams(
            dimension_semantics=("parallel",),  # v7x: split lookups across TCs
        ),
    )(idx, syn0, syn1)
    return out[:n]


def init_word2vec_params(key, emb_size, emb_dimension, dtype=jnp.float32):
    """Matches the PyTorch __init__: syn0 ~ U(-0.5/dim, 0.5/dim) with row 0
    zeroed (padding_idx=0), syn1 = zeros. Pick emb_dimension as a multiple of
    128 for lane-dense TPU access."""
    init_range = 0.5 / emb_dimension
    syn0 = jax.random.uniform(
        key, (emb_size, emb_dimension), dtype=dtype,
        minval=-init_range, maxval=init_range,
    )
    syn0 = syn0.at[0, :].set(0.0)
    syn1 = jnp.zeros((emb_size, emb_dimension), dtype=dtype)
    return syn0, syn1


if __name__ == "__main__":
    emb_size = 512        # vocabulary size
    emb_dimension = 128   # multiple of 128 -> lane-dense
    n_idx = 16            # batch of word indices (2 grid steps of 8)

    key = jax.random.PRNGKey(0)
    k_param, k_idx, k_syn1 = jax.random.split(key, 3)

    syn0, syn1 = init_word2vec_params(k_param, emb_size, emb_dimension)
    idx = jax.random.randint(k_idx, (n_idx,), 0, emb_size, dtype=jnp.int32)

    out = word2vec_get_embedding(idx, syn0, syn1)
    out = jax.block_until_ready(out)

    # Pure-JAX reference check (PyTorch-matching init: syn1 == 0).
    ref = syn0[idx] + syn1[idx]
    assert out.shape == (n_idx, emb_dimension)
    assert jnp.allclose(out, ref, atol=1e-6), "mismatch vs reference (zero syn1)"

    # Exercise the add path with a non-zero syn1 and a non-multiple-of-8 batch
    # (checks the padding/slice path).
    syn1_t = 0.01 * jax.random.normal(k_syn1, (emb_size, emb_dimension), jnp.float32)
    idx_odd = idx[:5]
    out2 = jax.block_until_ready(word2vec_get_embedding(idx_odd, syn0, syn1_t))
    ref2 = syn0[idx_odd] + syn1_t[idx_odd]
    assert out2.shape == (5, emb_dimension)
    assert jnp.allclose(out2, ref2, atol=1e-6), "mismatch vs reference (random syn1)"

    # TODO(synk): Word2Vec.forward() raises NotImplementedError in the base
    # class (only the SG/CBOW subclasses implement it), so no further forward
    # compute exists to translate.
    print("KERNEL_OK")
</pallas_src>

<mosaic_0001>
module attributes {stable_mosaic.version = 11 : i64} {
  func.func @_gather_add_kernel(%arg0: i32, %arg1: memref<16xi32, #tpu.memory_space<smem>>, %arg2: memref<512x128xf32, #tpu.memory_space<any>>, %arg3: memref<512x128xf32, #tpu.memory_space<any>>, %arg4: memref<8x128xf32, #tpu.memory_space<vmem>>, %arg5: memref<8x128xf32, #tpu.memory_space<vmem>>, %arg6: memref<8x128xf32, #tpu.memory_space<vmem>>, %arg7: memref<2x8x!tpu.dma_semaphore, #tpu.memory_space<semaphore_mem>>) attributes {dimension_semantics = [#tpu.dimension_semantics<parallel>], iteration_bounds = array<i64: 2>, scalar_prefetch = 1 : i64, scratch_operands = 3 : i64, tpu.core_type = #tpu.core_type<tc>, window_params = [{}, {}, {transform_indices = @transform_2, window_bounds = array<i64: 8, 128>}]} {
    %c8_i32 = arith.constant 8 : i32
    %0 = arith.muli %arg0, %c8_i32 : i32
    %c0_i32 = arith.constant 0 : i32
    %1 = arith.addi %0, %c0_i32 : i32
    %2 = arith.index_cast %1 : i32 to index
    %3 = memref.load %arg1[%2] : memref<16xi32, #tpu.memory_space<smem>>
    %c0_i32_0 = arith.constant 0 : i32
    %4 = arith.maxsi %3, %c0_i32_0 : i32
    %c511_i32 = arith.constant 511 : i32
    %5 = arith.minsi %4, %c511_i32 : i32
    %c0_i32_1 = arith.constant 0 : i32
    %c0_i32_2 = arith.constant 0 : i32
    %c0_i32_3 = arith.constant 0 : i32
    %c0_i32_4 = arith.constant 0 : i32
    %6 = tpu.memref_slice %arg2[%5, %c0_i32_4] : memref<512x128xf32, #tpu.memory_space<any>> -> memref<1x128xf32, #tpu.memory_space<any>>
    %7 = tpu.memref_squeeze %6 : memref<1x128xf32, #tpu.memory_space<any>> -> memref<128xf32, #tpu.memory_space<any>>
    %c0_i32_5 = arith.constant 0 : i32
    %8 = tpu.memref_slice %arg5[%c0_i32_1, %c0_i32_5] : memref<8x128xf32, #tpu.memory_space<vmem>> -> memref<1x128xf32, #tpu.memory_space<vmem>>
    %9 = tpu.memref_squeeze %8 : memref<1x128xf32, #tpu.memory_space<vmem>> -> memref<128xf32, #tpu.memory_space<vmem>>
    %10 = tpu.memref_slice %arg7[%c0_i32_2, %c0_i32_3] : memref<2x8x!tpu.dma_semaphore, #tpu.memory_space<semaphore_mem>> -> memref<1x1x!tpu.dma_semaphore, #tpu.memory_space<semaphore_mem>>
    %11 = tpu.memref_squeeze %10 : memref<1x1x!tpu.dma_semaphore, #tpu.memory_space<semaphore_mem>> -> memref<!tpu.dma_semaphore, #tpu.memory_space<semaphore_mem>>
    tpu.enqueue_dma source(%7 : memref<128xf32, #tpu.memory_space<any>>) target(%9 : memref<128xf32, #tpu.memory_space<vmem>>) target_semaphore(%11 : memref<!tpu.dma_semaphore, #tpu.memory_space<semaphore_mem>>)
    %c0_i32_6 = arith.constant 0 : i32
    %c1_i32 = arith.constant 1 : i32
    %c0_i32_7 = arith.constant 0 : i32
    %c0_i32_8 = arith.constant 0 : i32
    %12 = tpu.memref_slice %arg3[%5, %c0_i32_8] : memref<512x128xf32, #tpu.memory_space<any>> -> memref<1x128xf32, #tpu.memory_space<any>>
    %13 = tpu.memref_squeeze %12 : memref<1x128xf32, #tpu.memory_space<any>> -> memref<128xf32, #tpu.memory_space<any>>
    %c0_i32_9 = arith.constant 0 : i32
    %14 = tpu.memref_slice %arg6[%c0_i32_6, %c0_i32_9] : memref<8x128xf32, #tpu.memory_space<vmem>> -> memref<1x128xf32, #tpu.memory_space<vmem>>
    %15 = tpu.memref_squeeze %14 : memref<1x128xf32, #tpu.memory_space<vmem>> -> memref<128xf32, #tpu.memory_space<vmem>>
    %16 = tpu.memref_slice %arg7[%c1_i32, %c0_i32_7] : memref<2x8x!tpu.dma_semaphore, #tpu.memory_space<semaphore_mem>> -> memref<1x1x!tpu.dma_semaphore, #tpu.memory_space<semaphore_mem>>
    %17 = tpu.memref_squeeze %16 : memref<1x1x!tpu.dma_semaphore, #tpu.memory_space<semaphore_mem>> -> memref<!tpu.dma_semaphore, #tpu.memory_space<semaphore_mem>>
    tpu.enqueue_dma source(%13 : memref<128xf32, #tpu.memory_space<any>>) target(%15 : memref<128xf32, #tpu.memory_space<vmem>>) target_semaphore(%17 : memref<!tpu.dma_semaphore, #tpu.memory_space<semaphore_mem>>)
    %c1_i32_10 = arith.constant 1 : i32
    %18 = arith.addi %0, %c1_i32_10 : i32
    %19 = arith.index_cast %18 : i32 to index
    %20 = memref.load %arg1[%19] : memref<16xi32, #tpu.memory_space<smem>>
    %c0_i32_11 = arith.constant 0 : i32
    %21 = arith.maxsi %20, %c0_i32_11 : i32
    %c511_i32_12 = arith.constant 511 : i32
    %22 = arith.minsi %21, %c511_i32_12 : i32
    %c1_i32_13 = arith.constant 1 : i32
    %c0_i32_14 = arith.constant 0 : i32
    %c1_i32_15 = arith.constant 1 : i32
    %c0_i32_16 = arith.constant 0 : i32
    %23 = tpu.memref_slice %arg2[%22, %c0_i32_16] : memref<512x128xf32, #tpu.memory_space<any>> -> memref<1x128xf32, #tpu.memory_space<any>>
    %24 = tpu.memref_squeeze %23 : memref<1x128xf32, #tpu.memory_space<any>> -> memref<128xf32, #tpu.memory_space<any>>
    %c0_i32_17 = arith.constant 0 : i32
    %25 = tpu.memref_slice %arg5[%c1_i32_13, %c0_i32_17] : memref<8x128xf32, #tpu.memory_space<vmem>> -> memref<1x128xf32, #tpu.memory_space<vmem>>
    %26 = tpu.memref_squeeze %25 : memref<1x128xf32, #tpu.memory_space<vmem>> -> memref<128xf32, #tpu.memory_space<vmem>>
    %27 = tpu.memref_slice %arg7[%c0_i32_14, %c1_i32_15] : memref<2x8x!tpu.dma_semaphore, #tpu.memory_space<semaphore_mem>> -> memref<1x1x!tpu.dma_semaphore, #tpu.memory_space<semaphore_mem>>
    %28 = tpu.memref_squeeze %27 : memref<1x1x!tpu.dma_semaphore, #tpu.memory_space<semaphore_mem>> -> memref<!tpu.dma_semaphore, #tpu.memory_space<semaphore_mem>>
    tpu.enqueue_dma source(%24 : memref<128xf32, #tpu.memory_space<any>>) target(%26 : memref<128xf32, #tpu.memory_space<vmem>>) target_semaphore(%28 : memref<!tpu.dma_semaphore, #tpu.memory_space<semaphore_mem>>)
    %c1_i32_18 = arith.constant 1 : i32
    %c1_i32_19 = arith.constant 1 : i32
    %c1_i32_20 = arith.constant 1 : i32
    %c0_i32_21 = arith.constant 0 : i32
    %29 = tpu.memref_slice %arg3[%22, %c0_i32_21] : memref<512x128xf32, #tpu.memory_space<any>> -> memref<1x128xf32, #tpu.memory_space<any>>
    %30 = tpu.memref_squeeze %29 : memref<1x128xf32, #tpu.memory_space<any>> -> memref<128xf32, #tpu.memory_space<any>>
    %c0_i32_22 = arith.constant 0 : i32
    %31 = tpu.memref_slice %arg6[%c1_i32_18, %c0_i32_22] : memref<8x128xf32, #tpu.memory_space<vmem>> -> memref<1x128xf32, #tpu.memory_space<vmem>>
    %32 = tpu.memref_squeeze %31 : memref<1x128xf32, #tpu.memory_space<vmem>> -> memref<128xf32, #tpu.memory_space<vmem>>
    %33 = tpu.memref_slice %arg7[%c1_i32_19, %c1_i32_20] : memref<2x8x!tpu.dma_semaphore, #tpu.memory_space<semaphore_mem>> -> memref<1x1x!tpu.dma_semaphore, #tpu.memory_space<semaphore_mem>>
    %34 = tpu.memref_squeeze %33 : memref<1x1x!tpu.dma_semaphore, #tpu.memory_space<semaphore_mem>> -> memref<!tpu.dma_semaphore, #tpu.memory_space<semaphore_mem>>
    tpu.enqueue_dma source(%30 : memref<128xf32, #tpu.memory_space<any>>) target(%32 : memref<128xf32, #tpu.memory_space<vmem>>) target_semaphore(%34 : memref<!tpu.dma_semaphore, #tpu.memory_space<semaphore_mem>>)
    %c2_i32 = arith.constant 2 : i32
    %35 = arith.addi %0, %c2_i32 : i32
    %36 = arith.index_cast %35 : i32 to index
    %37 = memref.load %arg1[%36] : memref<16xi32, #tpu.memory_space<smem>>
    %c0_i32_23 = arith.constant 0 : i32
    %38 = arith.maxsi %37, %c0_i32_23 : i32
    %c511_i32_24 = arith.constant 511 : i32
    %39 = arith.minsi %38, %c511_i32_24 : i32
    %c2_i32_25 = arith.constant 2 : i32
    %c0_i32_26 = arith.constant 0 : i32
    %c2_i32_27 = arith.constant 2 : i32
    %c0_i32_28 = arith.constant 0 : i32
    %40 = tpu.memref_slice %arg2[%39, %c0_i32_28] : memref<512x128xf32, #tpu.memory_space<any>> -> memref<1x128xf32, #tpu.memory_space<any>>
    %41 = tpu.memref_squeeze %40 : memref<1x128xf32, #tpu.memory_space<any>> -> memref<128xf32, #tpu.memory_space<any>>
    %c0_i32_29 = arith.constant 0 : i32
    %42 = tpu.memref_slice %arg5[%c2_i32_25, %c0_i32_29] : memref<8x128xf32, #tpu.memory_space<vmem>> -> memref<1x128xf32, #tpu.memory_space<vmem>>
    %43 = tpu.memref_squeeze %42 : memref<1x128xf32, #tpu.memory_space<vmem>> -> memref<128xf32, #tpu.memory_space<vmem>>
    %44 = tpu.memref_slice %arg7[%c0_i32_26, %c2_i32_27] : memref<2x8x!tpu.dma_semaphore, #tpu.memory_space<semaphore_mem>> -> memref<1x1x!tpu.dma_semaphore, #tpu.memory_space<semaphore_mem>>
    %45 = tpu.memref_squeeze %44 : memref<1x1x!tpu.dma_semaphore, #tpu.memory_space<semaphore_mem>> -> memref<!tpu.dma_semaphore, #tpu.memory_space<semaphore_mem>>
    tpu.enqueue_dma source(%41 : memref<128xf32, #tpu.memory_space<any>>) target(%43 : memref<128xf32, #tpu.memory_space<vmem>>) target_semaphore(%45 : memref<!tpu.dma_semaphore, #tpu.memory_space<semaphore_mem>>)
    %c2_i32_30 = arith.constant 2 : i32
    %c1_i32_31 = arith.constant 1 : i32
    %c2_i32_32 = arith.constant 2 : i32
    %c0_i32_33 = arith.constant 0 : i32
    %46 = tpu.memref_slice %arg3[%39, %c0_i32_33] : memref<512x128xf32, #tpu.memory_space<any>> -> memref<1x128xf32, #tpu.memory_space<any>>
    %47 = tpu.memref_squeeze %46 : memref<1x128xf32, #tpu.memory_space<any>> -> memref<128xf32, #tpu.memory_space<any>>
    %c0_i32_34 = arith.constant 0 : i32
    %48 = tpu.memref_slice %arg6[%c2_i32_30, %c0_i32_34] : memref<8x128xf32, #tpu.memory_space<vmem>> -> memref<1x128xf32, #tpu.memory_space<vmem>>
    %49 = tpu.memref_squeeze %48 : memref<1x128xf32, #tpu.memory_space<vmem>> -> memref<128xf32, #tpu.memory_space<vmem>>
    %50 = tpu.memref_slice %arg7[%c1_i32_31, %c2_i32_32] : memref<2x8x!tpu.dma_semaphore, #tpu.memory_space<semaphore_mem>> -> memref<1x1x!tpu.dma_semaphore, #tpu.memory_space<semaphore_mem>>
    %51 = tpu.memref_squeeze %50 : memref<1x1x!tpu.dma_semaphore, #tpu.memory_space<semaphore_mem>> -> memref<!tpu.dma_semaphore, #tpu.memory_space<semaphore_mem>>
    tpu.enqueue_dma source(%47 : memref<128xf32, #tpu.memory_space<any>>) target(%49 : memref<128xf32, #tpu.memory_space<vmem>>) target_semaphore(%51 : memref<!tpu.dma_semaphore, #tpu.memory_space<semaphore_mem>>)
    %c3_i32 = arith.constant 3 : i32
    %52 = arith.addi %0, %c3_i32 : i32
    %53 = arith.index_cast %52 : i32 to index
    %54 = memref.load %arg1[%53] : memref<16xi32, #tpu.memory_space<smem>>
    %c0_i32_35 = arith.constant 0 : i32
    %55 = arith.maxsi %54, %c0_i32_35 : i32
    %c511_i32_36 = arith.constant 511 : i32
    %56 = arith.minsi %55, %c511_i32_36 : i32
    %c3_i32_37 = arith.constant 3 : i32
    %c0_i32_38 = arith.constant 0 : i32
    %c3_i32_39 = arith.constant 3 : i32
    %c0_i32_40 = arith.constant 0 : i32
    %57 = tpu.memref_slice %arg2[%56, %c0_i32_40] : memref<512x128xf32, #tpu.memory_space<any>> -> memref<1x128xf32, #tpu.memory_space<any>>
    %58 = tpu.memref_squeeze %57 : memref<1x128xf32, #tpu.memory_space<any>> -> memref<128xf32, #tpu.memory_space<any>>
    %c0_i32_41 = arith.constant 0 : i32
    %59 = tpu.memref_slice %arg5[%c3_i32_37, %c0_i32_41] : memref<8x128xf32, #tpu.memory_space<vmem>> -> memref<1x128xf32, #tpu.memory_space<vmem>>
    %60 = tpu.memref_squeeze %59 : memref<1x128xf32, #tpu.memory_space<vmem>> -> memref<128xf32, #tpu.memory_space<vmem>>
    %61 = tpu.memref_slice %arg7[%c0_i32_38, %c3_i32_39] : memref<2x8x!tpu.dma_semaphore, #tpu.memory_space<semaphore_mem>> -> memref<1x1x!tpu.dma_semaphore, #tpu.memory_space<semaphore_mem>>
    %62 = tpu.memref_squeeze %61 : memref<1x1x!tpu.dma_semaphore, #tpu.memory_space<semaphore_mem>> -> memref<!tpu.dma_semaphore, #tpu.memory_space<semaphore_mem>>
    tpu.enqueue_dma source(%58 : memref<128xf32, #tpu.memory_space<any>>) target(%60 : memref<128xf32, #tpu.memory_space<vmem>>) target_semaphore(%62 : memref<!tpu.dma_semaphore, #tpu.memory_space<semaphore_mem>>)
    %c3_i32_42 = arith.constant 3 : i32
    %c1_i32_43 = arith.constant 1 : i32
    %c3_i32_44 = arith.constant 3 : i32
    %c0_i32_45 = arith.constant 0 : i32
    %63 = tpu.memref_slice %arg3[%56, %c0_i32_45] : memref<512x128xf32, #tpu.memory_space<any>> -> memref<1x128xf32, #tpu.memory_space<any>>
    %64 = tpu.memref_squeeze %63 : memref<1x128xf32, #tpu.memory_space<any>> -> memref<128xf32, #tpu.memory_space<any>>
    %c0_i32_46 = arith.constant 0 : i32
    %65 = tpu.memref_slice %arg6[%c3_i32_42, %c0_i32_46] : memref<8x128xf32, #tpu.memory_space<vmem>> -> memref<1x128xf32, #tpu.memory_space<vmem>>
    %66 = tpu.memref_squeeze %65 : memref<1x128xf32, #tpu.memory_space<vmem>> -> memref<128xf32, #tpu.memory_space<vmem>>
    %67 = tpu.memref_slice %arg7[%c1_i32_43, %c3_i32_44] : memref<2x8x!tpu.dma_semaphore, #tpu.memory_space<semaphore_mem>> -> memref<1x1x!tpu.dma_semaphore, #tpu.memory_space<semaphore_mem>>
    %68 = tpu.memref_squeeze %67 : memref<1x1x!tpu.dma_semaphore, #tpu.memory_space<semaphore_mem>> -> memref<!tpu.dma_semaphore, #tpu.memory_space<semaphore_mem>>
    tpu.enqueue_dma source(%64 : memref<128xf32, #tpu.memory_space<any>>) target(%66 : memref<128xf32, #tpu.memory_space<vmem>>) target_semaphore(%68 : memref<!tpu.dma_semaphore, #tpu.memory_space<semaphore_mem>>)
    %c4_i32 = arith.constant 4 : i32
    %69 = arith.addi %0, %c4_i32 : i32
    %70 = arith.index_cast %69 : i32 to index
    %71 = memref.load %arg1[%70] : memref<16xi32, #tpu.memory_space<smem>>
    %c0_i32_47 = arith.constant 0 : i32
    %72 = arith.maxsi %71, %c0_i32_47 : i32
    %c511_i32_48 = arith.constant 511 : i32
    %73 = arith.minsi %72, %c511_i32_48 : i32
    %c4_i32_49 = arith.constant 4 : i32
    %c0_i32_50 = arith.constant 0 : i32
    %c4_i32_51 = arith.constant 4 : i32
    %c0_i32_52 = arith.constant 0 : i32
    %74 = tpu.memref_slice %arg2[%73, %c0_i32_52] : memref<512x128xf32, #tpu.memory_space<any>> -> memref<1x128xf32, #tpu.memory_space<any>>
    %75 = tpu.memref_squeeze %74 : memref<1x128xf32, #tpu.memory_space<any>> -> memref<128xf32, #tpu.memory_space<any>>
    %c0_i32_53 = arith.constant 0 : i32
    %76 = tpu.memref_slice %arg5[%c4_i32_49, %c0_i32_53] : memref<8x128xf32, #tpu.memory_space<vmem>> -> memref<1x128xf32, #tpu.memory_space<vmem>>
    %77 = tpu.memref_squeeze %76 : memref<1x128xf32, #tpu.memory_space<vmem>> -> memref<128xf32, #tpu.memory_space<vmem>>
    %78 = tpu.memref_slice %arg7[%c0_i32_50, %c4_i32_51] : memref<2x8x!tpu.dma_semaphore, #tpu.memory_space<semaphore_mem>> -> memref<1x1x!tpu.dma_semaphore, #tpu.memory_space<semaphore_mem>>
    %79 = tpu.memref_squeeze %78 : memref<1x1x!tpu.dma_semaphore, #tpu.memory_space<semaphore_mem>> -> memref<!tpu.dma_semaphore, #tpu.memory_space<semaphore_mem>>
    tpu.enqueue_dma source(%75 : memref<128xf32, #tpu.memory_space<any>>) target(%77 : memref<128xf32, #tpu.memory_space<vmem>>) target_semaphore(%79 : memref<!tpu.dma_semaphore, #tpu.memory_space<semaphore_mem>>)
    %c4_i32_54 = arith.constant 4 : i32
    %c1_i32_55 = arith.constant 1 : i32
    %c4_i32_56 = arith.constant 4 : i32
    %c0_i32_57 = arith.constant 0 : i32
    %80 = tpu.memref_slice %arg3[%73, %c0_i32_57] : memref<512x128xf32, #tpu.memory_space<any>> -> memref<1x128xf32, #tpu.memory_space<any>>
    %81 = tpu.memref_squeeze %80 : memref<1x128xf32, #tpu.memory_space<any>> -> memref<128xf32, #tpu.memory_space<any>>
    %c0_i32_58 = arith.constant 0 : i32
    %82 = tpu.memref_slice %arg6[%c4_i32_54, %c0_i32_58] : memref<8x128xf32, #tpu.memory_space<vmem>> -> memref<1x128xf32, #tpu.memory_space<vmem>>
    %83 = tpu.memref_squeeze %82 : memref<1x128xf32, #tpu.memory_space<vmem>> -> memref<128xf32, #tpu.memory_space<vmem>>
    %84 = tpu.memref_slice %arg7[%c1_i32_55, %c4_i32_56] : memref<2x8x!tpu.dma_semaphore, #tpu.memory_space<semaphore_mem>> -> memref<1x1x!tpu.dma_semaphore, #tpu.memory_space<semaphore_mem>>
    %85 = tpu.memref_squeeze %84 : memref<1x1x!tpu.dma_semaphore, #tpu.memory_space<semaphore_mem>> -> memref<!tpu.dma_semaphore, #tpu.memory_space<semaphore_mem>>
    tpu.enqueue_dma source(%81 : memref<128xf32, #tpu.memory_space<any>>) target(%83 : memref<128xf32, #tpu.memory_space<vmem>>) target_semaphore(%85 : memref<!tpu.dma_semaphore, #tpu.memory_space<semaphore_mem>>)
    %c5_i32 = arith.constant 5 : i32
    %86 = arith.addi %0, %c5_i32 : i32
    %87 = arith.index_cast %86 : i32 to index
    %88 = memref.load %arg1[%87] : memref<16xi32, #tpu.memory_space<smem>>
    %c0_i32_59 = arith.constant 0 : i32
    %89 = arith.maxsi %88, %c0_i32_59 : i32
    %c511_i32_60 = arith.constant 511 : i32
    %90 = arith.minsi %89, %c511_i32_60 : i32
    %c5_i32_61 = arith.constant 5 : i32
    %c0_i32_62 = arith.constant 0 : i32
    %c5_i32_63 = arith.constant 5 : i32
    %c0_i32_64 = arith.constant 0 : i32
    %91 = tpu.memref_slice %arg2[%90, %c0_i32_64] : memref<512x128xf32, #tpu.memory_space<any>> -> memref<1x128xf32, #tpu.memory_space<any>>
    %92 = tpu.memref_squeeze %91 : memref<1x128xf32, #tpu.memory_space<any>> -> memref<128xf32, #tpu.memory_space<any>>
    %c0_i32_65 = arith.constant 0 : i32
    %93 = tpu.memref_slice %arg5[%c5_i32_61, %c0_i32_65] : memref<8x128xf32, #tpu.memory_space<vmem>> -> memref<1x128xf32, #tpu.memory_space<vmem>>
    %94 = tpu.memref_squeeze %93 : memref<1x128xf32, #tpu.memory_space<vmem>> -> memref<128xf32, #tpu.memory_space<vmem>>
    %95 = tpu.memref_slice %arg7[%c0_i32_62, %c5_i32_63] : memref<2x8x!tpu.dma_semaphore, #tpu.memory_space<semaphore_mem>> -> memref<1x1x!tpu.dma_semaphore, #tpu.memory_space<semaphore_mem>>
    %96 = tpu.memref_squeeze %95 : memref<1x1x!tpu.dma_semaphore, #tpu.memory_space<semaphore_mem>> -> memref<!tpu.dma_semaphore, #tpu.memory_space<semaphore_mem>>
    tpu.enqueue_dma source(%92 : memref<128xf32, #tpu.memory_space<any>>) target(%94 : memref<128xf32, #tpu.memory_space<vmem>>) target_semaphore(%96 : memref<!tpu.dma_semaphore, #tpu.memory_space<semaphore_mem>>)
    %c5_i32_66 = arith.constant 5 : i32
    %c1_i32_67 = arith.constant 1 : i32
    %c5_i32_68 = arith.constant 5 : i32
    %c0_i32_69 = arith.constant 0 : i32
    %97 = tpu.memref_slice %arg3[%90, %c0_i32_69] : memref<512x128xf32, #tpu.memory_space<any>> -> memref<1x128xf32, #tpu.memory_space<any>>
    %98 = tpu.memref_squeeze %97 : memref<1x128xf32, #tpu.memory_space<any>> -> memref<128xf32, #tpu.memory_space<any>>
    %c0_i32_70 = arith.constant 0 : i32
    %99 = tpu.memref_slice %arg6[%c5_i32_66, %c0_i32_70] : memref<8x128xf32, #tpu.memory_space<vmem>> -> memref<1x128xf32, #tpu.memory_space<vmem>>
    %100 = tpu.memref_squeeze %99 : memref<1x128xf32, #tpu.memory_space<vmem>> -> memref<128xf32, #tpu.memory_space<vmem>>
    %101 = tpu.memref_slice %arg7[%c1_i32_67, %c5_i32_68] : memref<2x8x!tpu.dma_semaphore, #tpu.memory_space<semaphore_mem>> -> memref<1x1x!tpu.dma_semaphore, #tpu.memory_space<semaphore_mem>>
    %102 = tpu.memref_squeeze %101 : memref<1x1x!tpu.dma_semaphore, #tpu.memory_space<semaphore_mem>> -> memref<!tpu.dma_semaphore, #tpu.memory_space<semaphore_mem>>
    tpu.enqueue_dma source(%98 : memref<128xf32, #tpu.memory_space<any>>) target(%100 : memref<128xf32, #tpu.memory_space<vmem>>) target_semaphore(%102 : memref<!tpu.dma_semaphore, #tpu.memory_space<semaphore_mem>>)
    %c6_i32 = arith.constant 6 : i32
    %103 = arith.addi %0, %c6_i32 : i32
    %104 = arith.index_cast %103 : i32 to index
    %105 = memref.load %arg1[%104] : memref<16xi32, #tpu.memory_space<smem>>
    %c0_i32_71 = arith.constant 0 : i32
    %106 = arith.maxsi %105, %c0_i32_71 : i32
    %c511_i32_72 = arith.constant 511 : i32
    %107 = arith.minsi %106, %c511_i32_72 : i32
    %c6_i32_73 = arith.constant 6 : i32
    %c0_i32_74 = arith.constant 0 : i32
    %c6_i32_75 = arith.constant 6 : i32
    %c0_i32_76 = arith.constant 0 : i32
    %108 = tpu.memref_slice %arg2[%107, %c0_i32_76] : memref<512x128xf32, #tpu.memory_space<any>> -> memref<1x128xf32, #tpu.memory_space<any>>
    %109 = tpu.memref_squeeze %108 : memref<1x128xf32, #tpu.memory_space<any>> -> memref<128xf32, #tpu.memory_space<any>>
    %c0_i32_77 = arith.constant 0 : i32
    %110 = tpu.memref_slice %arg5[%c6_i32_73, %c0_i32_77] : memref<8x128xf32, #tpu.memory_space<vmem>> -> memref<1x128xf32, #tpu.memory_space<vmem>>
    %111 = tpu.memref_squeeze %110 : memref<1x128xf32, #tpu.memory_space<vmem>> -> memref<128xf32, #tpu.memory_space<vmem>>
    %112 = tpu.memref_slice %arg7[%c0_i32_74, %c6_i32_75] : memref<2x8x!tpu.dma_semaphore, #tpu.memory_space<semaphore_mem>> -> memref<1x1x!tpu.dma_semaphore, #tpu.memory_space<semaphore_mem>>
    %113 = tpu.memref_squeeze %112 : memref<1x1x!tpu.dma_semaphore, #tpu.memory_space<semaphore_mem>> -> memref<!tpu.dma_semaphore, #tpu.memory_space<semaphore_mem>>
    tpu.enqueue_dma source(%109 : memref<128xf32, #tpu.memory_space<any>>) target(%111 : memref<128xf32, #tpu.memory_space<vmem>>) target_semaphore(%113 : memref<!tpu.dma_semaphore, #tpu.memory_space<semaphore_mem>>)
    %c6_i32_78 = arith.constant 6 : i32
    %c1_i32_79 = arith.constant 1 : i32
    %c6_i32_80 = arith.constant 6 : i32
    %c0_i32_81 = arith.constant 0 : i32
    %114 = tpu.memref_slice %arg3[%107, %c0_i32_81] : memref<512x128xf32, #tpu.memory_space<any>> -> memref<1x128xf32, #tpu.memory_space<any>>
    %115 = tpu.memref_squeeze %114 : memref<1x128xf32, #tpu.memory_space<any>> -> memref<128xf32, #tpu.memory_space<any>>
    %c0_i32_82 = arith.constant 0 : i32
    %116 = tpu.memref_slice %arg6[%c6_i32_78, %c0_i32_82] : memref<8x128xf32, #tpu.memory_space<vmem>> -> memref<1x128xf32, #tpu.memory_space<vmem>>
    %117 = tpu.memref_squeeze %116 : memref<1x128xf32, #tpu.memory_space<vmem>> -> memref<128xf32, #tpu.memory_space<vmem>>
    %118 = tpu.memref_slice %arg7[%c1_i32_79, %c6_i32_80] : memref<2x8x!tpu.dma_semaphore, #tpu.memory_space<semaphore_mem>> -> memref<1x1x!tpu.dma_semaphore, #tpu.memory_space<semaphore_mem>>
    %119 = tpu.memref_squeeze %118 : memref<1x1x!tpu.dma_semaphore, #tpu.memory_space<semaphore_mem>> -> memref<!tpu.dma_semaphore, #tpu.memory_space<semaphore_mem>>
    tpu.enqueue_dma source(%115 : memref<128xf32, #tpu.memory_space<any>>) target(%117 : memref<128xf32, #tpu.memory_space<vmem>>) target_semaphore(%119 : memref<!tpu.dma_semaphore, #tpu.memory_space<semaphore_mem>>)
    %c7_i32 = arith.constant 7 : i32
    %120 = arith.addi %0, %c7_i32 : i32
    %121 = arith.index_cast %120 : i32 to index
    %122 = memref.load %arg1[%121] : memref<16xi32, #tpu.memory_space<smem>>
    %c0_i32_83 = arith.constant 0 : i32
    %123 = arith.maxsi %122, %c0_i32_83 : i32
    %c511_i32_84 = arith.constant 511 : i32
    %124 = arith.minsi %123, %c511_i32_84 : i32
    %c7_i32_85 = arith.constant 7 : i32
    %c0_i32_86 = arith.constant 0 : i32
    %c7_i32_87 = arith.constant 7 : i32
    %c0_i32_88 = arith.constant 0 : i32
    %125 = tpu.memref_slice %arg2[%124, %c0_i32_88] : memref<512x128xf32, #tpu.memory_space<any>> -> memref<1x128xf32, #tpu.memory_space<any>>
    %126 = tpu.memref_squeeze %125 : memref<1x128xf32, #tpu.memory_space<any>> -> memref<128xf32, #tpu.memory_space<any>>
    %c0_i32_89 = arith.constant 0 : i32
    %127 = tpu.memref_slice %arg5[%c7_i32_85, %c0_i32_89] : memref<8x128xf32, #tpu.memory_space<vmem>> -> memref<1x128xf32, #tpu.memory_space<vmem>>
    %128 = tpu.memref_squeeze %127 : memref<1x128xf32, #tpu.memory_space<vmem>> -> memref<128xf32, #tpu.memory_space<vmem>>
    %129 = tpu.memref_slice %arg7[%c0_i32_86, %c7_i32_87] : memref<2x8x!tpu.dma_semaphore, #tpu.memory_space<semaphore_mem>> -> memref<1x1x!tpu.dma_semaphore, #tpu.memory_space<semaphore_mem>>
    %130 = tpu.memref_squeeze %129 : memref<1x1x!tpu.dma_semaphore, #tpu.memory_space<semaphore_mem>> -> memref<!tpu.dma_semaphore, #tpu.memory_space<semaphore_mem>>
    tpu.enqueue_dma source(%126 : memref<128xf32, #tpu.memory_space<any>>) target(%128 : memref<128xf32, #tpu.memory_space<vmem>>) target_semaphore(%130 : memref<!tpu.dma_semaphore, #tpu.memory_space<semaphore_mem>>)
    %c7_i32_90 = arith.constant 7 : i32
    %c1_i32_91 = arith.constant 1 : i32
    %c7_i32_92 = arith.constant 7 : i32
    %c0_i32_93 = arith.constant 0 : i32
    %131 = tpu.memref_slice %arg3[%124, %c0_i32_93] : memref<512x128xf32, #tpu.memory_space<any>> -> memref<1x128xf32, #tpu.memory_space<any>>
    %132 = tpu.memref_squeeze %131 : memref<1x128xf32, #tpu.memory_space<any>> -> memref<128xf32, #tpu.memory_space<any>>
    %c0_i32_94 = arith.constant 0 : i32
    %133 = tpu.memref_slice %arg6[%c7_i32_90, %c0_i32_94] : memref<8x128xf32, #tpu.memory_space<vmem>> -> memref<1x128xf32, #tpu.memory_space<vmem>>
    %134 = tpu.memref_squeeze %133 : memref<1x128xf32, #tpu.memory_space<vmem>> -> memref<128xf32, #tpu.memory_space<vmem>>
    %135 = tpu.memref_slice %arg7[%c1_i32_91, %c7_i32_92] : memref<2x8x!tpu.dma_semaphore, #tpu.memory_space<semaphore_mem>> -> memref<1x1x!tpu.dma_semaphore, #tpu.memory_space<semaphore_mem>>
    %136 = tpu.memref_squeeze %135 : memref<1x1x!tpu.dma_semaphore, #tpu.memory_space<semaphore_mem>> -> memref<!tpu.dma_semaphore, #tpu.memory_space<semaphore_mem>>
    tpu.enqueue_dma source(%132 : memref<128xf32, #tpu.memory_space<any>>) target(%134 : memref<128xf32, #tpu.memory_space<vmem>>) target_semaphore(%136 : memref<!tpu.dma_semaphore, #tpu.memory_space<semaphore_mem>>)
    %c0_i32_95 = arith.constant 0 : i32
    %c0_i32_96 = arith.constant 0 : i32
    %c0_i32_97 = arith.constant 0 : i32
    %c0_i32_98 = arith.constant 0 : i32
    %137 = tpu.memref_slice %arg2[%5, %c0_i32_98] : memref<512x128xf32, #tpu.memory_space<any>> -> memref<1x128xf32, #tpu.memory_space<any>>
    %138 = tpu.memref_squeeze %137 : memref<1x128xf32, #tpu.memory_space<any>> -> memref<128xf32, #tpu.memory_space<any>>
    %c0_i32_99 = arith.constant 0 : i32
    %139 = tpu.memref_slice %arg5[%c0_i32_95, %c0_i32_99] : memref<8x128xf32, #tpu.memory_space<vmem>> -> memref<1x128xf32, #tpu.memory_space<vmem>>
    %140 = tpu.memref_squeeze %139 : memref<1x128xf32, #tpu.memory_space<vmem>> -> memref<128xf32, #tpu.memory_space<vmem>>
    %141 = tpu.memref_slice %arg7[%c0_i32_96, %c0_i32_97] : memref<2x8x!tpu.dma_semaphore, #tpu.memory_space<semaphore_mem>> -> memref<1x1x!tpu.dma_semaphore, #tpu.memory_space<semaphore_mem>>
    %142 = tpu.memref_squeeze %141 : memref<1x1x!tpu.dma_semaphore, #tpu.memory_space<semaphore_mem>> -> memref<!tpu.dma_semaphore, #tpu.memory_space<semaphore_mem>>
    tpu.wait_dma2 semaphore(%142 : memref<!tpu.dma_semaphore, #tpu.memory_space<semaphore_mem>>) src(%138 : memref<128xf32, #tpu.memory_space<any>>) dst(%140 : memref<128xf32, #tpu.memory_space<vmem>>)
    %c0_i32_100 = arith.constant 0 : i32
    %c1_i32_101 = arith.constant 1 : i32
    %c0_i32_102 = arith.constant 0 : i32
    %c0_i32_103 = arith.constant 0 : i32
    %143 = tpu.memref_slice %arg3[%5, %c0_i32_103] : memref<512x128xf32, #tpu.memory_space<any>> -> memref<1x128xf32, #tpu.memory_space<any>>
    %144 = tpu.memref_squeeze %143 : memref<1x128xf32, #tpu.memory_space<any>> -> memref<128xf32, #tpu.memory_space<any>>
    %c0_i32_104 = arith.constant 0 : i32
    %145 = tpu.memref_slice %arg6[%c0_i32_100, %c0_i32_104] : memref<8x128xf32, #tpu.memory_space<vmem>> -> memref<1x128xf32, #tpu.memory_space<vmem>>
    %146 = tpu.memref_squeeze %145 : memref<1x128xf32, #tpu.memory_space<vmem>> -> memref<128xf32, #tpu.memory_space<vmem>>
    %147 = tpu.memref_slice %arg7[%c1_i32_101, %c0_i32_102] : memref<2x8x!tpu.dma_semaphore, #tpu.memory_space<semaphore_mem>> -> memref<1x1x!tpu.dma_semaphore, #tpu.memory_space<semaphore_mem>>
    %148 = tpu.memref_squeeze %147 : memref<1x1x!tpu.dma_semaphore, #tpu.memory_space<semaphore_mem>> -> memref<!tpu.dma_semaphore, #tpu.memory_space<semaphore_mem>>
    tpu.wait_dma2 semaphore(%148 : memref<!tpu.dma_semaphore, #tpu.memory_space<semaphore_mem>>) src(%144 : memref<128xf32, #tpu.memory_space<any>>) dst(%146 : memref<128xf32, #tpu.memory_space<vmem>>)
    %c1_i32_105 = arith.constant 1 : i32
    %c0_i32_106 = arith.constant 0 : i32
    %c1_i32_107 = arith.constant 1 : i32
    %c0_i32_108 = arith.constant 0 : i32
    %149 = tpu.memref_slice %arg2[%22, %c0_i32_108] : memref<512x128xf32, #tpu.memory_space<any>> -> memref<1x128xf32, #tpu.memory_space<any>>
    %150 = tpu.memref_squeeze %149 : memref<1x128xf32, #tpu.memory_space<any>> -> memref<128xf32, #tpu.memory_space<any>>
    %c0_i32_109 = arith.constant 0 : i32
    %151 = tpu.memref_slice %arg5[%c1_i32_105, %c0_i32_109] : memref<8x128xf32, #tpu.memory_space<vmem>> -> memref<1x128xf32, #tpu.memory_space<vmem>>
    %152 = tpu.memref_squeeze %151 : memref<1x128xf32, #tpu.memory_space<vmem>> -> memref<128xf32, #tpu.memory_space<vmem>>
    %153 = tpu.memref_slice %arg7[%c0_i32_106, %c1_i32_107] : memref<2x8x!tpu.dma_semaphore, #tpu.memory_space<semaphore_mem>> -> memref<1x1x!tpu.dma_semaphore, #tpu.memory_space<semaphore_mem>>
    %154 = tpu.memref_squeeze %153 : memref<1x1x!tpu.dma_semaphore, #tpu.memory_space<semaphore_mem>> -> memref<!tpu.dma_semaphore, #tpu.memory_space<semaphore_mem>>
    tpu.wait_dma2 semaphore(%154 : memref<!tpu.dma_semaphore, #tpu.memory_space<semaphore_mem>>) src(%150 : memref<128xf32, #tpu.memory_space<any>>) dst(%152 : memref<128xf32, #tpu.memory_space<vmem>>)
    %c1_i32_110 = arith.constant 1 : i32
    %c1_i32_111 = arith.constant 1 : i32
    %c1_i32_112 = arith.constant 1 : i32
    %c0_i32_113 = arith.constant 0 : i32
    %155 = tpu.memref_slice %arg3[%22, %c0_i32_113] : memref<512x128xf32, #tpu.memory_space<any>> -> memref<1x128xf32, #tpu.memory_space<any>>
    %156 = tpu.memref_squeeze %155 : memref<1x128xf32, #tpu.memory_space<any>> -> memref<128xf32, #tpu.memory_space<any>>
    %c0_i32_114 = arith.constant 0 : i32
    %157 = tpu.memref_slice %arg6[%c1_i32_110, %c0_i32_114] : memref<8x128xf32, #tpu.memory_space<vmem>> -> memref<1x128xf32, #tpu.memory_space<vmem>>
    %158 = tpu.memref_squeeze %157 : memref<1x128xf32, #tpu.memory_space<vmem>> -> memref<128xf32, #tpu.memory_space<vmem>>
    %159 = tpu.memref_slice %arg7[%c1_i32_111, %c1_i32_112] : memref<2x8x!tpu.dma_semaphore, #tpu.memory_space<semaphore_mem>> -> memref<1x1x!tpu.dma_semaphore, #tpu.memory_space<semaphore_mem>>
    %160 = tpu.memref_squeeze %159 : memref<1x1x!tpu.dma_semaphore, #tpu.memory_space<semaphore_mem>> -> memref<!tpu.dma_semaphore, #tpu.memory_space<semaphore_mem>>
    tpu.wait_dma2 semaphore(%160 : memref<!tpu.dma_semaphore, #tpu.memory_space<semaphore_mem>>) src(%156 : memref<128xf32, #tpu.memory_space<any>>) dst(%158 : memref<128xf32, #tpu.memory_space<vmem>>)
    %c2_i32_115 = arith.constant 2 : i32
    %c0_i32_116 = arith.constant 0 : i32
    %c2_i32_117 = arith.constant 2 : i32
    %c0_i32_118 = arith.constant 0 : i32
    %161 = tpu.memref_slice %arg2[%39, %c0_i32_118] : memref<512x128xf32, #tpu.memory_space<any>> -> memref<1x128xf32, #tpu.memory_space<any>>
    %162 = tpu.memref_squeeze %161 : memref<1x128xf32, #tpu.memory_space<any>> -> memref<128xf32, #tpu.memory_space<any>>
    %c0_i32_119 = arith.constant 0 : i32
    %163 = tpu.memref_slice %arg5[%c2_i32_115, %c0_i32_119] : memref<8x128xf32, #tpu.memory_space<vmem>> -> memref<1x128xf32, #tpu.memory_space<vmem>>
    %164 = tpu.memref_squeeze %163 : memref<1x128xf32, #tpu.memory_space<vmem>> -> memref<128xf32, #tpu.memory_space<vmem>>
    %165 = tpu.memref_slice %arg7[%c0_i32_116, %c2_i32_117] : memref<2x8x!tpu.dma_semaphore, #tpu.memory_space<semaphore_mem>> -> memref<1x1x!tpu.dma_semaphore, #tpu.memory_space<semaphore_mem>>
    %166 = tpu.memref_squeeze %165 : memref<1x1x!tpu.dma_semaphore, #tpu.memory_space<semaphore_mem>> -> memref<!tpu.dma_semaphore, #tpu.memory_space<semaphore_mem>>
    tpu.wait_dma2 semaphore(%166 : memref<!tpu.dma_semaphore, #tpu.memory_space<semaphore_mem>>) src(%162 : memref<128xf32, #tpu.memory_space<any>>) dst(%164 : memref<128xf32, #tpu.memory_space<vmem>>)
    %c2_i32_120 = arith.constant 2 : i32
    %c1_i32_121 = arith.constant 1 : i32
    %c2_i32_122 = arith.constant 2 : i32
    %c0_i32_123 = arith.constant 0 : i32
    %167 = tpu.memref_slice %arg3[%39, %c0_i32_123] : memref<512x128xf32, #tpu.memory_space<any>> -> memref<1x128xf32, #tpu.memory_space<any>>
    %168 = tpu.memref_squeeze %167 : memref<1x128xf32, #tpu.memory_space<any>> -> memref<128xf32, #tpu.memory_space<any>>
    %c0_i32_124 = arith.constant 0 : i32
    %169 = tpu.memref_slice %arg6[%c2_i32_120, %c0_i32_124] : memref<8x128xf32, #tpu.memory_space<vmem>> -> memref<1x128xf32, #tpu.memory_space<vmem>>
    %170 = tpu.memref_squeeze %169 : memref<1x128xf32, #tpu.memory_space<vmem>> -> memref<128xf32, #tpu.memory_space<vmem>>
    %171 = tpu.memref_slice %arg7[%c1_i32_121, %c2_i32_122] : memref<2x8x!tpu.dma_semaphore, #tpu.memory_space<semaphore_mem>> -> memref<1x1x!tpu.dma_semaphore, #tpu.memory_space<semaphore_mem>>
    %172 = tpu.memref_squeeze %171 : memref<1x1x!tpu.dma_semaphore, #tpu.memory_space<semaphore_mem>> -> memref<!tpu.dma_semaphore, #tpu.memory_space<semaphore_mem>>
    tpu.wait_dma2 semaphore(%172 : memref<!tpu.dma_semaphore, #tpu.memory_space<semaphore_mem>>) src(%168 : memref<128xf32, #tpu.memory_space<any>>) dst(%170 : memref<128xf32, #tpu.memory_space<vmem>>)
    %c3_i32_125 = arith.constant 3 : i32
    %c0_i32_126 = arith.constant 0 : i32
    %c3_i32_127 = arith.constant 3 : i32
    %c0_i32_128 = arith.constant 0 : i32
    %173 = tpu.memref_slice %arg2[%56, %c0_i32_128] : memref<512x128xf32, #tpu.memory_space<any>> -> memref<1x128xf32, #tpu.memory_space<any>>
    %174 = tpu.memref_squeeze %173 : memref<1x128xf32, #tpu.memory_space<any>> -> memref<128xf32, #tpu.memory_space<any>>
    %c0_i32_129 = arith.constant 0 : i32
    %175 = tpu.memref_slice %arg5[%c3_i32_125, %c0_i32_129] : memref<8x128xf32, #tpu.memory_space<vmem>> -> memref<1x128xf32, #tpu.memory_space<vmem>>
    %176 = tpu.memref_squeeze %175 : memref<1x128xf32, #tpu.memory_space<vmem>> -> memref<128xf32, #tpu.memory_space<vmem>>
    %177 = tpu.memref_slice %arg7[%c0_i32_126, %c3_i32_127] : memref<2x8x!tpu.dma_semaphore, #tpu.memory_space<semaphore_mem>> -> memref<1x1x!tpu.dma_semaphore, #tpu.memory_space<semaphore_mem>>
    %178 = tpu.memref_squeeze %177 : memref<1x1x!tpu.dma_semaphore, #tpu.memory_space<semaphore_mem>> -> memref<!tpu.dma_semaphore, #tpu.memory_space<semaphore_mem>>
    tpu.wait_dma2 semaphore(%178 : memref<!tpu.dma_semaphore, #tpu.memory_space<semaphore_mem>>) src(%174 : memref<128xf32, #tpu.memory_space<any>>) dst(%176 : memref<128xf32, #tpu.memory_space<vmem>>)
    %c3_i32_130 = arith.constant 3 : i32
    %c1_i32_131 = arith.constant 1 : i32
    %c3_i32_132 = arith.constant 3 : i32
    %c0_i32_133 = arith.constant 0 : i32
    %179 = tpu.memref_slice %arg3[%56, %c0_i32_133] : memref<512x128xf32, #tpu.memory_space<any>> -> memref<1x128xf32, #tpu.memory_space<any>>
    %180 = tpu.memref_squeeze %179 : memref<1x128xf32, #tpu.memory_space<any>> -> memref<128xf32, #tpu.memory_space<any>>
    %c0_i32_134 = arith.constant 0 : i32
    %181 = tpu.memref_slice %arg6[%c3_i32_130, %c0_i32_134] : memref<8x128xf32, #tpu.memory_space<vmem>> -> memref<1x128xf32, #tpu.memory_space<vmem>>
    %182 = tpu.memref_squeeze %181 : memref<1x128xf32, #tpu.memory_space<vmem>> -> memref<128xf32, #tpu.memory_space<vmem>>
    %183 = tpu.memref_slice %arg7[%c1_i32_131, %c3_i32_132] : memref<2x8x!tpu.dma_semaphore, #tpu.memory_space<semaphore_mem>> -> memref<1x1x!tpu.dma_semaphore, #tpu.memory_space<semaphore_mem>>
    %184 = tpu.memref_squeeze %183 : memref<1x1x!tpu.dma_semaphore, #tpu.memory_space<semaphore_mem>> -> memref<!tpu.dma_semaphore, #tpu.memory_space<semaphore_mem>>
    tpu.wait_dma2 semaphore(%184 : memref<!tpu.dma_semaphore, #tpu.memory_space<semaphore_mem>>) src(%180 : memref<128xf32, #tpu.memory_space<any>>) dst(%182 : memref<128xf32, #tpu.memory_space<vmem>>)
    %c4_i32_135 = arith.constant 4 : i32
    %c0_i32_136 = arith.constant 0 : i32
    %c4_i32_137 = arith.constant 4 : i32
    %c0_i32_138 = arith.constant 0 : i32
    %185 = tpu.memref_slice %arg2[%73, %c0_i32_138] : memref<512x128xf32, #tpu.memory_space<any>> -> memref<1x128xf32, #tpu.memory_space<any>>
    %186 = tpu.memref_squeeze %185 : memref<1x128xf32, #tpu.memory_space<any>> -> memref<128xf32, #tpu.memory_space<any>>
    %c0_i32_139 = arith.constant 0 : i32
    %187 = tpu.memref_slice %arg5[%c4_i32_135, %c0_i32_139] : memref<8x128xf32, #tpu.memory_space<vmem>> -> memref<1x128xf32, #tpu.memory_space<vmem>>
    %188 = tpu.memref_squeeze %187 : memref<1x128xf32, #tpu.memory_space<vmem>> -> memref<128xf32, #tpu.memory_space<vmem>>
    %189 = tpu.memref_slice %arg7[%c0_i32_136, %c4_i32_137] : memref<2x8x!tpu.dma_semaphore, #tpu.memory_space<semaphore_mem>> -> memref<1x1x!tpu.dma_semaphore, #tpu.memory_space<semaphore_mem>>
    %190 = tpu.memref_squeeze %189 : memref<1x1x!tpu.dma_semaphore, #tpu.memory_space<semaphore_mem>> -> memref<!tpu.dma_semaphore, #tpu.memory_space<semaphore_mem>>
    tpu.wait_dma2 semaphore(%190 : memref<!tpu.dma_semaphore, #tpu.memory_space<semaphore_mem>>) src(%186 : memref<128xf32, #tpu.memory_space<any>>) dst(%188 : memref<128xf32, #tpu.memory_space<vmem>>)
    %c4_i32_140 = arith.constant 4 : i32
    %c1_i32_141 = arith.constant 1 : i32
    %c4_i32_142 = arith.constant 4 : i32
    %c0_i32_143 = arith.constant 0 : i32
    %191 = tpu.memref_slice %arg3[%73, %c0_i32_143] : memref<512x128xf32, #tpu.memory_space<any>> -> memref<1x128xf32, #tpu.memory_space<any>>
    %192 = tpu.memref_squeeze %191 : memref<1x128xf32, #tpu.memory_space<any>> -> memref<128xf32, #tpu.memory_space<any>>
    %c0_i32_144 = arith.constant 0 : i32
    %193 = tpu.memref_slice %arg6[%c4_i32_140, %c0_i32_144] : memref<8x128xf32, #tpu.memory_space<vmem>> -> memref<1x128xf32, #tpu.memory_space<vmem>>
    %194 = tpu.memref_squeeze %193 : memref<1x128xf32, #tpu.memory_space<vmem>> -> memref<128xf32, #tpu.memory_space<vmem>>
    %195 = tpu.memref_slice %arg7[%c1_i32_141, %c4_i32_142] : memref<2x8x!tpu.dma_semaphore, #tpu.memory_space<semaphore_mem>> -> memref<1x1x!tpu.dma_semaphore, #tpu.memory_space<semaphore_mem>>
    %196 = tpu.memref_squeeze %195 : memref<1x1x!tpu.dma_semaphore, #tpu.memory_space<semaphore_mem>> -> memref<!tpu.dma_semaphore, #tpu.memory_space<semaphore_mem>>
    tpu.wait_dma2 semaphore(%196 : memref<!tpu.dma_semaphore, #tpu.memory_space<semaphore_mem>>) src(%192 : memref<128xf32, #tpu.memory_space<any>>) dst(%194 : memref<128xf32, #tpu.memory_space<vmem>>)
    %c5_i32_145 = arith.constant 5 : i32
    %c0_i32_146 = arith.constant 0 : i32
    %c5_i32_147 = arith.constant 5 : i32
    %c0_i32_148 = arith.constant 0 : i32
    %197 = tpu.memref_slice %arg2[%90, %c0_i32_148] : memref<512x128xf32, #tpu.memory_space<any>> -> memref<1x128xf32, #tpu.memory_space<any>>
    %198 = tpu.memref_squeeze %197 : memref<1x128xf32, #tpu.memory_space<any>> -> memref<128xf32, #tpu.memory_space<any>>
    %c0_i32_149 = arith.constant 0 : i32
    %199 = tpu.memref_slice %arg5[%c5_i32_145, %c0_i32_149] : memref<8x128xf32, #tpu.memory_space<vmem>> -> memref<1x128xf32, #tpu.memory_space<vmem>>
    %200 = tpu.memref_squeeze %199 : memref<1x128xf32, #tpu.memory_space<vmem>> -> memref<128xf32, #tpu.memory_space<vmem>>
    %201 = tpu.memref_slice %arg7[%c0_i32_146, %c5_i32_147] : memref<2x8x!tpu.dma_semaphore, #tpu.memory_space<semaphore_mem>> -> memref<1x1x!tpu.dma_semaphore, #tpu.memory_space<semaphore_mem>>
    %202 = tpu.memref_squeeze %201 : memref<1x1x!tpu.dma_semaphore, #tpu.memory_space<semaphore_mem>> -> memref<!tpu.dma_semaphore, #tpu.memory_space<semaphore_mem>>
    tpu.wait_dma2 semaphore(%202 : memref<!tpu.dma_semaphore, #tpu.memory_space<semaphore_mem>>) src(%198 : memref<128xf32, #tpu.memory_space<any>>) dst(%200 : memref<128xf32, #tpu.memory_space<vmem>>)
    %c5_i32_150 = arith.constant 5 : i32
    %c1_i32_151 = arith.constant 1 : i32
    %c5_i32_152 = arith.constant 5 : i32
    %c0_i32_153 = arith.constant 0 : i32
    %203 = tpu.memref_slice %arg3[%90, %c0_i32_153] : memref<512x128xf32, #tpu.memory_space<any>> -> memref<1x128xf32, #tpu.memory_space<any>>
    %204 = tpu.memref_squeeze %203 : memref<1x128xf32, #tpu.memory_space<any>> -> memref<128xf32, #tpu.memory_space<any>>
    %c0_i32_154 = arith.constant 0 : i32
    %205 = tpu.memref_slice %arg6[%c5_i32_150, %c0_i32_154] : memref<8x128xf32, #tpu.memory_space<vmem>> -> memref<1x128xf32, #tpu.memory_space<vmem>>
    %206 = tpu.memref_squeeze %205 : memref<1x128xf32, #tpu.memory_space<vmem>> -> memref<128xf32, #tpu.memory_space<vmem>>
    %207 = tpu.memref_slice %arg7[%c1_i32_151, %c5_i32_152] : memref<2x8x!tpu.dma_semaphore, #tpu.memory_space<semaphore_mem>> -> memref<1x1x!tpu.dma_semaphore, #tpu.memory_space<semaphore_mem>>
    %208 = tpu.memref_squeeze %207 : memref<1x1x!tpu.dma_semaphore, #tpu.memory_space<semaphore_mem>> -> memref<!tpu.dma_semaphore, #tpu.memory_space<semaphore_mem>>
    tpu.wait_dma2 semaphore(%208 : memref<!tpu.dma_semaphore, #tpu.memory_space<semaphore_mem>>) src(%204 : memref<128xf32, #tpu.memory_space<any>>) dst(%206 : memref<128xf32, #tpu.memory_space<vmem>>)
    %c6_i32_155 = arith.constant 6 : i32
    %c0_i32_156 = arith.constant 0 : i32
    %c6_i32_157 = arith.constant 6 : i32
    %c0_i32_158 = arith.constant 0 : i32
    %209 = tpu.memref_slice %arg2[%107, %c0_i32_158] : memref<512x128xf32, #tpu.memory_space<any>> -> memref<1x128xf32, #tpu.memory_space<any>>
    %210 = tpu.memref_squeeze %209 : memref<1x128xf32, #tpu.memory_space<any>> -> memref<128xf32, #tpu.memory_space<any>>
    %c0_i32_159 = arith.constant 0 : i32
    %211 = tpu.memref_slice %arg5[%c6_i32_155, %c0_i32_159] : memref<8x128xf32, #tpu.memory_space<vmem>> -> memref<1x128xf32, #tpu.memory_space<vmem>>
    %212 = tpu.memref_squeeze %211 : memref<1x128xf32, #tpu.memory_space<vmem>> -> memref<128xf32, #tpu.memory_space<vmem>>
    %213 = tpu.memref_slice %arg7[%c0_i32_156, %c6_i32_157] : memref<2x8x!tpu.dma_semaphore, #tpu.memory_space<semaphore_mem>> -> memref<1x1x!tpu.dma_semaphore, #tpu.memory_space<semaphore_mem>>
    %214 = tpu.memref_squeeze %213 : memref<1x1x!tpu.dma_semaphore, #tpu.memory_space<semaphore_mem>> -> memref<!tpu.dma_semaphore, #tpu.memory_space<semaphore_mem>>
    tpu.wait_dma2 semaphore(%214 : memref<!tpu.dma_semaphore, #tpu.memory_space<semaphore_mem>>) src(%210 : memref<128xf32, #tpu.memory_space<any>>) dst(%212 : memref<128xf32, #tpu.memory_space<vmem>>)
    %c6_i32_160 = arith.constant 6 : i32
    %c1_i32_161 = arith.constant 1 : i32
    %c6_i32_162 = arith.constant 6 : i32
    %c0_i32_163 = arith.constant 0 : i32
    %215 = tpu.memref_slice %arg3[%107, %c0_i32_163] : memref<512x128xf32, #tpu.memory_space<any>> -> memref<1x128xf32, #tpu.memory_space<any>>
    %216 = tpu.memref_squeeze %215 : memref<1x128xf32, #tpu.memory_space<any>> -> memref<128xf32, #tpu.memory_space<any>>
    %c0_i32_164 = arith.constant 0 : i32
    %217 = tpu.memref_slice %arg6[%c6_i32_160, %c0_i32_164] : memref<8x128xf32, #tpu.memory_space<vmem>> -> memref<1x128xf32, #tpu.memory_space<vmem>>
    %218 = tpu.memref_squeeze %217 : memref<1x128xf32, #tpu.memory_space<vmem>> -> memref<128xf32, #tpu.memory_space<vmem>>
    %219 = tpu.memref_slice %arg7[%c1_i32_161, %c6_i32_162] : memref<2x8x!tpu.dma_semaphore, #tpu.memory_space<semaphore_mem>> -> memref<1x1x!tpu.dma_semaphore, #tpu.memory_space<semaphore_mem>>
    %220 = tpu.memref_squeeze %219 : memref<1x1x!tpu.dma_semaphore, #tpu.memory_space<semaphore_mem>> -> memref<!tpu.dma_semaphore, #tpu.memory_space<semaphore_mem>>
    tpu.wait_dma2 semaphore(%220 : memref<!tpu.dma_semaphore, #tpu.memory_space<semaphore_mem>>) src(%216 : memref<128xf32, #tpu.memory_space<any>>) dst(%218 : memref<128xf32, #tpu.memory_space<vmem>>)
    %c7_i32_165 = arith.constant 7 : i32
    %c0_i32_166 = arith.constant 0 : i32
    %c7_i32_167 = arith.constant 7 : i32
    %c0_i32_168 = arith.constant 0 : i32
    %221 = tpu.memref_slice %arg2[%124, %c0_i32_168] : memref<512x128xf32, #tpu.memory_space<any>> -> memref<1x128xf32, #tpu.memory_space<any>>
    %222 = tpu.memref_squeeze %221 : memref<1x128xf32, #tpu.memory_space<any>> -> memref<128xf32, #tpu.memory_space<any>>
    %c0_i32_169 = arith.constant 0 : i32
    %223 = tpu.memref_slice %arg5[%c7_i32_165, %c0_i32_169] : memref<8x128xf32, #tpu.memory_space<vmem>> -> memref<1x128xf32, #tpu.memory_space<vmem>>
    %224 = tpu.memref_squeeze %223 : memref<1x128xf32, #tpu.memory_space<vmem>> -> memref<128xf32, #tpu.memory_space<vmem>>
    %225 = tpu.memref_slice %arg7[%c0_i32_166, %c7_i32_167] : memref<2x8x!tpu.dma_semaphore, #tpu.memory_space<semaphore_mem>> -> memref<1x1x!tpu.dma_semaphore, #tpu.memory_space<semaphore_mem>>
    %226 = tpu.memref_squeeze %225 : memref<1x1x!tpu.dma_semaphore, #tpu.memory_space<semaphore_mem>> -> memref<!tpu.dma_semaphore, #tpu.memory_space<semaphore_mem>>
    tpu.wait_dma2 semaphore(%226 : memref<!tpu.dma_semaphore, #tpu.memory_space<semaphore_mem>>) src(%222 : memref<128xf32, #tpu.memory_space<any>>) dst(%224 : memref<128xf32, #tpu.memory_space<vmem>>)
    %c7_i32_170 = arith.constant 7 : i32
    %c1_i32_171 = arith.constant 1 : i32
    %c7_i32_172 = arith.constant 7 : i32
    %c0_i32_173 = arith.constant 0 : i32
    %227 = tpu.memref_slice %arg3[%124, %c0_i32_173] : memref<512x128xf32, #tpu.memory_space<any>> -> memref<1x128xf32, #tpu.memory_space<any>>
    %228 = tpu.memref_squeeze %227 : memref<1x128xf32, #tpu.memory_space<any>> -> memref<128xf32, #tpu.memory_space<any>>
    %c0_i32_174 = arith.constant 0 : i32
    %229 = tpu.memref_slice %arg6[%c7_i32_170, %c0_i32_174] : memref<8x128xf32, #tpu.memory_space<vmem>> -> memref<1x128xf32, #tpu.memory_space<vmem>>
    %230 = tpu.memref_squeeze %229 : memref<1x128xf32, #tpu.memory_space<vmem>> -> memref<128xf32, #tpu.memory_space<vmem>>
    %231 = tpu.memref_slice %arg7[%c1_i32_171, %c7_i32_172] : memref<2x8x!tpu.dma_semaphore, #tpu.memory_space<semaphore_mem>> -> memref<1x1x!tpu.dma_semaphore, #tpu.memory_space<semaphore_mem>>
    %232 = tpu.memref_squeeze %231 : memref<1x1x!tpu.dma_semaphore, #tpu.memory_space<semaphore_mem>> -> memref<!tpu.dma_semaphore, #tpu.memory_space<semaphore_mem>>
    tpu.wait_dma2 semaphore(%232 : memref<!tpu.dma_semaphore, #tpu.memory_space<semaphore_mem>>) src(%228 : memref<128xf32, #tpu.memory_space<any>>) dst(%230 : memref<128xf32, #tpu.memory_space<vmem>>)
    %c0 = arith.constant 0 : index
    %c0_175 = arith.constant 0 : index
    %233 = vector.load %arg5[%c0, %c0_175] : memref<8x128xf32, #tpu.memory_space<vmem>>, vector<8x128xf32>
    %c0_176 = arith.constant 0 : index
    %c0_177 = arith.constant 0 : index
    %234 = vector.load %arg6[%c0_176, %c0_177] : memref<8x128xf32, #tpu.memory_space<vmem>>, vector<8x128xf32>
    %235 = arith.addf %233, %234 : vector<8x128xf32>
    %c0_178 = arith.constant 0 : index
    %c0_179 = arith.constant 0 : index
    %236 = vector.load %arg4[%c0_178, %c0_179] : memref<8x128xf32, #tpu.memory_space<vmem>>, vector<8x128xf32>
    tpu.vector_store %arg4[%c0_178, %c0_179], %235 {strides = array<i32>} : memref<8x128xf32, #tpu.memory_space<vmem>>, vector<8x128xf32>,
    return
  }
  func.func @transform_2(%arg0: i32, %arg1: memref<16xi32, #tpu.memory_space<smem>>) -> (i32, i32) {
    %c0_i32 = arith.constant 0 : i32
    %c0_i32_0 = arith.constant 0 : i32
    return %arg0, %c0_i32 : i32, i32
  }
}

</mosaic_0001>

<bundles_post_ra>
// kernel: tpu_custom_call.1
= control target key start
LH: loop header
LB: loop body
LE: loop exit
PB: predicated region body
PF: predicated region fallthrough
CT: control target
= control target key end

     0   :  { %s1167_s12 = smov [#allocation6]   ;;  %s1632_s0 = inlined_call_operand.hbm [shape: s32[16], index: 0, kind: input, shape index: {}]   ;;  %s1633_s1 = inlined_call_operand.hbm [shape: f32[512,128], index: 1, kind: input, shape index: {}]   ;;  %s1634_s2 = inlined_call_operand.hbm [shape: f32[512,128], index: 2, kind: input, shape index: {}]   ;;  %s1635_s3 = inlined_call_operand.hbm [shape: f32[16,128], index: 3, kind: output, shape index: {}]  }
   0x1   :  { %9 = dma.hbm_to_smem %s1632_s0, 16, %s1167_s12, [#allocation5] }
   0x2   :  { %1117 = dma.done.wait [#allocation5], 16 }
   0x3   :  { %1118 = vsyncadd [#allocation5], 4294967280 }
   0x4   :  { %11 = sfence }
   0x5   :  { %12 = vsyncpa [#allocation8], 0 }
   0x6   :  { %14 = vsyncpa [#allocation8 + $0x1], 0  ;;  %s1208_s15 = smov 0   ;;  %s1210_s16 = smov 0  }
   0x7   :  { %s1212_s17 = smov 0  }
   0x8 LB: > { %1641 = sst [smem:[#allocation61_spill]] %s1157_s15  ;;  %s574_s0 = sadd.s32 4294967295, %s1165_s17   ;;  %s1165_s17 = sphi %s1212_s17, %s1650_s17   ;;  %s1161_s16 = sphi %s1210_s16, %s1653_s16   ;;  %s1157_s15 = sphi %s1208_s15, %s1652_s15  }
   0x9   : > { %s1225_s18 = sadd.s32 1, %s1165_s17   ;;  %s26_s20 = sadd.s32 1, %s1161_s16 }
   0xa   : > { %1642 = sst [smem:[#allocation62_spill]] %s1225_s18  ;;  %s23_s19 = ssub.s32 %s1165_s17, %s1225_s18 }
   0xb   : > { %p24_p0 = scmp.eq.s32.totalorder %s23_s19, 0  ;;  %p575_p1 = scmp.ne.s32.totalorder %s23_s19, 0 }
   0xc   : > { %p30_p2 = scmp.eq.s32.totalorder %s1165_s17, 1  ;;  %p35_p3 = scmp.ne.s32.totalorder %s1161_s16, %s1157_s15 }
   0xd   : > { %s1234_s21 = scalar_select %p24_p0, %s1161_s16, %s26_s20  }
   0xe   : > { %p1236_p4 = por %p575_p1, %p30_p2  ;;  %p36_p5 = scmp.eq.s32.totalorder %s574_s0, 1 }
   0xf   : > { %1643 = sst [smem:[#allocation63_spill]] %s1234_s21  ;;  %p576_p7 = scmp.ge.s32.totalorder %s1165_s17, 2 }
  0x10   : > { %p1240_p6 = por %p36_p5, %p35_p3  ;;  %s1636_s24 = sand.u32 (!%p576_p7), 1, %s1161_s16  }
  0x11   : > { %45 = sbr.rel (%p576_p7) target bundleno = 408 (0x198), region = 12  ;;  %s1247_s25 = sshll.u32 (!%p576_p7), %s1165_s17, 3 }
  0x12   : > { %s1645_s23 = scalar_select %p1240_p6, 1, 0 }
  0x13   : > { %s1251_s26 = sshll.u32 (!%p576_p7), %s1636_s24, 3  ;;  %s54_s27 = sld [smem:[#allocation6 + %s1247_s25]] (!%p576_p7) }
  0x14   : > { %1646 = sst [smem:[#allocation64_spill]] %s1645_s23  ;;  %s1168_s28 = smov (!%p576_p7), [#allocation2]  }
  0x15   : > { %s68_s29 = sshll.u32 (!%p576_p7), %s1168_s28, 4  ;;  %s1169_s30 = smov (!%p576_p7), [#allocation3]   ;;  %s1254_s29 = int_to_ptr.vmem [resolvable:$true] %s68_s29 }
  0x16   : > { %s82_s4 = sshll.u32 %s1169_s30, 4  ;;  %s86_s5 = sadd.s32 1, %s1247_s25  ;;  %s1256_s4 = int_to_ptr.vmem [resolvable:$true] %s82_s4 }
  0x17   : > { %s1259_s6 = sld [smem:[#allocation6 + %s86_s5]]  ;;  %s1170_s7 = smov [#allocation2 + $0x1]  }
  0x18   : > { %s103_s8 = sshll.u32 %s1170_s7, 4  ;;  %s1171_s9 = smov [#allocation3 + $0x1]   ;;  %s1261_s8 = int_to_ptr.vmem [resolvable:$true] %s103_s8 }
  0x19   : > { %p55_p8 = scmp.gt.s32.totalorder %s54_s27, 0  ;;  %p579_p9 = scmp.lt.s32.totalorder %s54_s27, 511 }
  0x1a   : > { %s118_s10 = sshll.u32 %s1171_s9, 4  ;;  %s1278_s7 = scalar_lea.hbm %s1633_s1, 8192  ;;  %s1265_s10 = int_to_ptr.vmem [resolvable:$true] %s118_s10 }
  0x1b   : > { %s1655_s27 = smov (!%p55_p8, %s54_s27), 0 }
  0x1c   : > { %s1657_s27 = smov (!%p579_p9, %s1655_s27), 511 }
  0x1d   : > { %p88_p10 = scmp.gt.s32.totalorder %s1259_s6, 0  ;;  %p586_p11 = scmp.lt.s32.totalorder %s1259_s6, 511 }
  0x1e   : > { %s584_s11 = sshll.u32 %s1657_s27, 4 }
  0x1f   : > { %s60_s14 = scalar_lea.hbm %s1633_s1, %s584_s11  ;;  %s1273_s20 = scalar_lea.hbm %s1634_s2, %s584_s11 }
  0x20   : > { %s727_s28 = scalar_lea.hbm %s60_s14, 16  ;;  %p730_p13 = scmp.lt.s32.totalorder %s60_s14, %s1633_s1 }
  0x21   : > { %p728_p12 = scmp.ne.s32.totalorder %s60_s14, %s727_s28  ;;  %p731_p0 = scmp.lt.s32.totalorder %s1278_s7, %s727_s28 }
  0x23   : > { %p732_p1 = por %p731_p0, %p730_p13 }
  0x25   : > { %p733_p2 = pnand %p732_p1, %p728_p12 }
  0x27   : > { %736 = shalt.err (!%p733_p2)  }
  0x28   : > { %s737_s11 = scalar_lea.vmem %s1254_s29, 16  ;;  %s1287_s12 = scalar_lea.vmem %s1254_s29, 128 }
  0x29   : > { %p738_p3 = scmp.ne.s32.totalorder %s1254_s29, %s737_s11  ;;  %p742_p5 = scmp.lt.s32.totalorder %s1254_s29, %s1254_s29 }
  0x2a   : > { %p743_p7 = scmp.lt.s32.totalorder %s1287_s12, %s737_s11 }
  0x2c   : > { %p744_p8 = por %p743_p7, %p742_p5 }
  0x2e   : > { %p745_p9 = pnand %p744_p8, %p738_p3 }
  0x30   : > { %748 = shalt.err (!%p745_p9)  }
  0x31   : > { %71 = dma.hbm_to_vmem [thread:$0]  %s60_s14, 16, %s1254_s29, [#allocation4] }
  0x32   : > { %s749_s13 = scalar_lea.hbm %s1273_s20, 16  ;;  %s1298_s28 = scalar_lea.hbm %s1634_s2, 8192 }
  0x33   : > { %p750_p12 = scmp.ne.s32.totalorder %s1273_s20, %s749_s13  ;;  %p752_p13 = scmp.lt.s32.totalorder %s1273_s20, %s1634_s2 }
  0x34   : > { %p753_p0 = scmp.lt.s32.totalorder %s1298_s28, %s749_s13 }
  0x36   : > { %p754_p1 = por %p753_p0, %p752_p13 }
  0x38   : > { %p755_p2 = pnand %p754_p1, %p750_p12 }
  0x3a   : > { %758 = shalt.err (!%p755_p2)  }
  0x3b   : > { %s759_s14 = scalar_lea.vmem %s1256_s4, 16  ;;  %s1308_s9 = scalar_lea.vmem %s1256_s4, 128 }
  0x3c   : > { %p760_p3 = scmp.ne.s32.totalorder %s1256_s4, %s759_s14  ;;  %p764_p5 = scmp.lt.s32.totalorder %s1256_s4, %s1256_s4 }
  0x3d   : > { %p765_p7 = scmp.lt.s32.totalorder %s1308_s9, %s759_s14 }
  0x3f   : > { %p766_p8 = por %p765_p7, %p764_p5 }
  0x41   : > { %p767_p9 = pnand %p766_p8, %p760_p3 }
  0x43   : > { %770 = shalt.err (!%p767_p9)  }
  0x44   : > { %85 = dma.hbm_to_vmem [thread:$0]  %s1273_s20, 16, %s1256_s4, [#allocation4 + $0x8] }
  0x45   : > { %s89_s27 = scalar_select %p88_p10, %s1259_s6, 0 }
  0x46   : > { %s122_s11 = sadd.s32 2, %s1247_s25  ;;  %s1172_s0 = smov [#allocation2 + $0x2]  }
  0x47   : > { %s1659_s27 = smov (!%p586_p11, %s89_s27), 511  ;;  %s1321_s13 = sld [smem:[#allocation6 + %s122_s11]] }
  0x48   : > { %s139_s19 = sshll.u32 %s1172_s0, 4  ;;  %s591_s30 = sshll.u32 %s1659_s27, 4  ;;  %s1323_s19 = int_to_ptr.vmem [resolvable:$true] %s139_s19 }
  0x49   : > { %s93_s24 = scalar_lea.hbm %s1633_s1, %s591_s30  ;;  %s1331_s20 = scalar_lea.hbm %s1634_s2, %s591_s30 }
  0x4a   : > { %s771_s23 = scalar_lea.hbm %s93_s24, 16  ;;  %p774_p11 = scmp.lt.s32.totalorder %s93_s24, %s1633_s1 }
  0x4b   : > { %p772_p10 = scmp.ne.s32.totalorder %s93_s24, %s771_s23  ;;  %p775_p12 = scmp.lt.s32.totalorder %s1278_s7, %s771_s23 }
  0x4d   : > { %p776_p13 = por %p775_p12, %p774_p11 }
  0x4f   : > { %p777_p0 = pnand %p776_p13, %p772_p10 }
  0x51   : > { %780 = shalt.err (!%p777_p0)  }
  0x52   : > { %s781_s27 = scalar_lea.vmem %s1261_s8, 16  ;;  %p786_p2 = scmp.lt.s32.totalorder %s1261_s8, %s1254_s29 }
  0x53   : > { %p782_p1 = scmp.ne.s32.totalorder %s1261_s8, %s781_s27  ;;  %p787_p3 = scmp.lt.s32.totalorder %s1287_s12, %s781_s27 }
  0x55   : > { %p788_p5 = por %p787_p3, %p786_p2 }
  0x57   : > { %p789_p7 = pnand %p788_p5, %p782_p1 }
  0x59   : > { %792 = shalt.err (!%p789_p7)  }
  0x5a   : > { %106 = dma.hbm_to_vmem [thread:$0]  %s93_s24, 16, %s1261_s8, [#allocation4 + $0x1] }
  0x5b   : > { %s793_s15 = scalar_lea.hbm %s1331_s20, 16  ;;  %p796_p9 = scmp.lt.s32.totalorder %s1331_s20, %s1634_s2 }
  0x5c   : > { %p794_p8 = scmp.ne.s32.totalorder %s1331_s20, %s793_s15  ;;  %p797_p10 = scmp.lt.s32.totalorder %s1298_s28, %s793_s15 }
  0x5e   : > { %p798_p11 = por %p797_p10, %p796_p9 }
  0x60   : > { %p799_p12 = pnand %p798_p11, %p794_p8 }
  0x62   : > { %802 = shalt.err (!%p799_p12)  }
  0x63   : > { %s803_s23 = scalar_lea.vmem %s1265_s10, 16  ;;  %p808_p0 = scmp.lt.s32.totalorder %s1265_s10, %s1256_s4 }
  0x64   : > { %p804_p13 = scmp.ne.s32.totalorder %s1265_s10, %s803_s23  ;;  %p809_p1 = scmp.lt.s32.totalorder %s1308_s9, %s803_s23 }
  0x66   : > { %p810_p2 = por %p809_p1, %p808_p0 }
  0x68   : > { %p811_p3 = pnand %p810_p2, %p804_p13 }
  0x6a   : > { %814 = shalt.err (!%p811_p3)  }
  0x6b   : > { %121 = dma.hbm_to_vmem [thread:$0]  %s1331_s20, 16, %s1265_s10, [#allocation4 + $0x9] }
  0x6c   : > { %s158_s24 = sadd.s32 3, %s1247_s25  ;;  %p124_p5 = scmp.gt.s32.totalorder %s1321_s13, 0 }
  0x6d   : > { %p593_p7 = scmp.lt.s32.totalorder %s1321_s13, 511  ;;  %s1173_s8 = smov [#allocation3 + $0x2]  }
  0x6e   : > { %s154_s11 = sshll.u32 %s1173_s8, 4  ;;  %s1360_s0 = sld [smem:[#allocation6 + %s158_s24]]  ;;  %s1363_s11 = int_to_ptr.vmem [resolvable:$true] %s154_s11 }
  0x6f   : > { %s1661_s13 = smov (!%p124_p5, %s1321_s13), 0  ;;  %s1174_s30 = smov [#allocation2 + $0x3]  }
  0x70   : > { %s1663_s13 = smov (!%p593_p7, %s1661_s13), 511  ;;  %s175_s5 = sshll.u32 %s1174_s30, 4  ;;  %s1365_s5 = int_to_ptr.vmem [resolvable:$true] %s175_s5 }
  0x71   : > { %s598_s14 = sshll.u32 %s1663_s13, 4 }
  0x72   : > { %s129_s10 = scalar_lea.hbm %s1633_s1, %s598_s14  ;;  %s1373_s18 = scalar_lea.hbm %s1634_s2, %s598_s14 }
  0x73   : > { %s815_s21 = scalar_lea.hbm %s129_s10, 16  ;;  %p818_p9 = scmp.lt.s32.totalorder %s129_s10, %s1633_s1 }
  0x74   : > { %p816_p8 = scmp.ne.s32.totalorder %s129_s10, %s815_s21  ;;  %p819_p10 = scmp.lt.s32.totalorder %s1278_s7, %s815_s21 }
  0x76   : > { %p820_p11 = por %p819_p10, %p818_p9 }
  0x78   : > { %p821_p12 = pnand %p820_p11, %p816_p8 }
  0x7a   : > { %824 = shalt.err (!%p821_p12)  }
  0x7b   : > { %s825_s13 = scalar_lea.vmem %s1323_s19, 16  ;;  %p830_p0 = scmp.lt.s32.totalorder %s1323_s19, %s1254_s29 }
  0x7c   : > { %p826_p13 = scmp.ne.s32.totalorder %s1323_s19, %s825_s13  ;;  %p831_p1 = scmp.lt.s32.totalorder %s1287_s12, %s825_s13 }
  0x7e   : > { %p832_p2 = por %p831_p1, %p830_p0 }
  0x80   : > { %p833_p3 = pnand %p832_p2, %p826_p13 }
  0x82   : > { %836 = shalt.err (!%p833_p3)  }
  0x83   : > { %142 = dma.hbm_to_vmem [thread:$0]  %s129_s10, 16, %s1323_s19, [#allocation4 + $0x2] }
  0x84   : > { %s837_s8 = scalar_lea.hbm %s1373_s18, 16  ;;  %p840_p7 = scmp.lt.s32.totalorder %s1373_s18, %s1634_s2 }
  0x85   : > { %p838_p5 = scmp.ne.s32.totalorder %s1373_s18, %s837_s8  ;;  %p841_p8 = scmp.lt.s32.totalorder %s1298_s28, %s837_s8 }
  0x87   : > { %p842_p9 = por %p841_p8, %p840_p7 }
  0x89   : > { %p843_p10 = pnand %p842_p9, %p838_p5 }
  0x8b   : > { %846 = shalt.err (!%p843_p10)  }
  0x8c   : > { %s847_s6 = scalar_lea.vmem %s1363_s11, 16  ;;  %p852_p12 = scmp.lt.s32.totalorder %s1363_s11, %s1256_s4 }
  0x8d   : > { %p848_p11 = scmp.ne.s32.totalorder %s1363_s11, %s847_s6  ;;  %p853_p13 = scmp.lt.s32.totalorder %s1308_s9, %s847_s6 }
  0x8f   : > { %p854_p0 = por %p853_p13, %p852_p12 }
  0x91   : > { %p855_p1 = pnand %p854_p0, %p848_p11 }
  0x93   : > { %858 = shalt.err (!%p855_p1)  }
  0x94   : > { %157 = dma.hbm_to_vmem [thread:$0]  %s1373_s18, 16, %s1363_s11, [#allocation4 + $0xa] }
  0x95   : > { %p160_p2 = scmp.gt.s32.totalorder %s1360_s0, 0  ;;  %p600_p3 = scmp.lt.s32.totalorder %s1360_s0, 511 }
  0x96   : > { %s1175_s19 = smov [#allocation3 + $0x3]   ;;  %s194_s10 = sadd.s32 4, %s1247_s25 }
  0x97   : > { %s190_s27 = sshll.u32 %s1175_s19, 4  ;;  %s1665_s0 = smov (!%p160_p2, %s1360_s0), 0  ;;  %s1403_s27 = int_to_ptr.vmem [resolvable:$true] %s190_s27 }
  0x98   : > { %s1405_s20 = sld [smem:[#allocation6 + %s194_s10]]  ;;  %s1667_s0 = smov (!%p600_p3, %s1665_s0), 511 }
  0x99   : > { %s605_s15 = sshll.u32 %s1667_s0, 4  ;;  %s1176_s21 = smov [#allocation2 + $0x4]  }
  0x9a   : > { %s1407_s23 = sshll.u32 %s1176_s21, 4  ;;  %s165_s11 = scalar_lea.hbm %s1633_s1, %s605_s15  ;;  %s212_s23 = int_to_ptr.vmem [resolvable:$true] %s1407_s23 }
  0x9b   : > { %s1415_s30 = scalar_lea.hbm %s1634_s2, %s605_s15  ;;  %s859_s14 = scalar_lea.hbm %s165_s11, 16 }
  0x9c   : > { %p860_p5 = scmp.ne.s32.totalorder %s165_s11, %s859_s14  ;;  %p862_p7 = scmp.lt.s32.totalorder %s165_s11, %s1633_s1 }
  0x9d   : > { %p863_p8 = scmp.lt.s32.totalorder %s1278_s7, %s859_s14 }
  0x9f   : > { %p864_p9 = por %p863_p8, %p862_p7 }
  0xa1   : > { %p865_p10 = pnand %p864_p9, %p860_p5 }
  0xa3   : > { %868 = shalt.err (!%p865_p10)  }
  0xa4   : > { %s869_s0 = scalar_lea.vmem %s1365_s5, 16  ;;  %p874_p12 = scmp.lt.s32.totalorder %s1365_s5, %s1254_s29 }
  0xa5   : > { %p870_p11 = scmp.ne.s32.totalorder %s1365_s5, %s869_s0  ;;  %p875_p13 = scmp.lt.s32.totalorder %s1287_s12, %s869_s0 }
  0xa7   : > { %p876_p0 = por %p875_p13, %p874_p12 }
  0xa9   : > { %p877_p1 = pnand %p876_p0, %p870_p11 }
  0xab   : > { %880 = shalt.err (!%p877_p1)  }
  0xac   : > { %178 = dma.hbm_to_vmem [thread:$0]  %s165_s11, 16, %s1365_s5, [#allocation4 + $0x3] }
  0xad   : > { %s881_s10 = scalar_lea.hbm %s1415_s30, 16  ;;  %p884_p3 = scmp.lt.s32.totalorder %s1415_s30, %s1634_s2 }
  0xae   : > { %p882_p2 = scmp.ne.s32.totalorder %s1415_s30, %s881_s10  ;;  %p885_p5 = scmp.lt.s32.totalorder %s1298_s28, %s881_s10 }
  0xb0   : > { %p886_p7 = por %p885_p5, %p884_p3 }
  0xb2   : > { %p887_p8 = pnand %p886_p7, %p882_p2 }
  0xb4   : > { %890 = shalt.err (!%p887_p8)  }
  0xb5   : > { %s891_s24 = scalar_lea.vmem %s1403_s27, 16  ;;  %p896_p10 = scmp.lt.s32.totalorder %s1403_s27, %s1256_s4 }
  0xb6   : > { %p892_p9 = scmp.ne.s32.totalorder %s1403_s27, %s891_s24  ;;  %p897_p11 = scmp.lt.s32.totalorder %s1308_s9, %s891_s24 }
  0xb8   : > { %p898_p12 = por %p897_p11, %p896_p10 }
  0xba   : > { %p899_p13 = pnand %p898_p12, %p892_p9 }
  0xbc   : > { %902 = shalt.err (!%p899_p13)  }
  0xbd   : > { %193 = dma.hbm_to_vmem [thread:$0]  %s1415_s30, 16, %s1403_s27, [#allocation4 + $0xb] }
  0xbe   : > { %p196_p0 = scmp.gt.s32.totalorder %s1405_s20, 0  ;;  %p607_p1 = scmp.lt.s32.totalorder %s1405_s20, 511 }
  0xbf   : > { %s1177_s5 = smov [#allocation3 + $0x4]   ;;  %s230_s11 = sadd.s32 5, %s1247_s25 }
  0xc0   : > { %s226_s13 = sshll.u32 %s1177_s5, 4  ;;  %s1669_s20 = smov (!%p196_p0, %s1405_s20), 0  ;;  %s1445_s13 = int_to_ptr.vmem [resolvable:$true] %s226_s13 }
  0xc1   : > { %s1671_s20 = smov (!%p607_p1, %s1669_s20), 511  ;;  %s1448_s18 = sld [smem:[#allocation6 + %s230_s11]] }
  0xc2   : > { %s612_s8 = sshll.u32 %s1671_s20, 4  ;;  %s1178_s14 = smov [#allocation2 + $0x5]  }
  0xc3   : > { %s1450_s6 = sshll.u32 %s1178_s14, 4  ;;  %s201_s27 = scalar_lea.hbm %s1633_s1, %s612_s8  ;;  %s1481_s6 = int_to_ptr.vmem [resolvable:$true] %s1450_s6 }
  0xc4   : > { %s1458_s15 = scalar_lea.hbm %s1634_s2, %s612_s8  ;;  %s903_s21 = scalar_lea.hbm %s201_s27, 16 }
  0xc5   : > { %p904_p2 = scmp.ne.s32.totalorder %s201_s27, %s903_s21  ;;  %p906_p3 = scmp.lt.s32.totalorder %s201_s27, %s1633_s1 }
  0xc6   : > { %p907_p5 = scmp.lt.s32.totalorder %s1278_s7, %s903_s21 }
  0xc8   : > { %p908_p7 = por %p907_p5, %p906_p3 }
  0xca   : > { %p909_p8 = pnand %p908_p7, %p904_p2 }
  0xcc   : > { %912 = shalt.err (!%p909_p8)  }
  0xcd   : > { %s913_s20 = scalar_lea.vmem %s212_s23, 16  ;;  %p918_p10 = scmp.lt.s32.totalorder %s212_s23, %s1254_s29 }
  0xce   : > { %p914_p9 = scmp.ne.s32.totalorder %s212_s23, %s913_s20  ;;  %p919_p11 = scmp.lt.s32.totalorder %s1287_s12, %s913_s20 }
  0xd0   : > { %p920_p12 = por %p919_p11, %p918_p10 }
  0xd2   : > { %p921_p13 = pnand %p920_p12, %p914_p9 }
  0xd4   : > { %924 = shalt.err (!%p921_p13)  }
  0xd5   : > { %214 = dma.hbm_to_vmem [thread:$0]  %s201_s27, 16, %s212_s23, [#allocation4 + $0x4] }
  0xd6   : > { %s925_s11 = scalar_lea.hbm %s1458_s15, 16  ;;  %p928_p1 = scmp.lt.s32.totalorder %s1458_s15, %s1634_s2 }
  0xd7   : > { %p926_p0 = scmp.ne.s32.totalorder %s1458_s15, %s925_s11  ;;  %p929_p2 = scmp.lt.s32.totalorder %s1298_s28, %s925_s11 }
  0xd9   : > { %p930_p3 = por %p929_p2, %p928_p1 }
  0xdb   : > { %p931_p5 = pnand %p930_p3, %p926_p0 }
  0xdd   : > { %934 = shalt.err (!%p931_p5)  }
  0xde   : > { %s935_s23 = scalar_lea.vmem %s1445_s13, 16  ;;  %p940_p8 = scmp.lt.s32.totalorder %s1445_s13, %s1256_s4 }
  0xdf   : > { %p936_p7 = scmp.ne.s32.totalorder %s1445_s13, %s935_s23  ;;  %p941_p9 = scmp.lt.s32.totalorder %s1308_s9, %s935_s23 }
  0xe1   : > { %p942_p10 = por %p941_p9, %p940_p8 }
  0xe3   : > { %p943_p11 = pnand %p942_p10, %p936_p7 }
  0xe5   : > { %946 = shalt.err (!%p943_p11)  }
  0xe6   : > { %229 = dma.hbm_to_vmem [thread:$0]  %s1458_s15, 16, %s1445_s13, [#allocation4 + $0xc] }
  0xe7   : > { %p232_p12 = scmp.gt.s32.totalorder %s1448_s18, 0  ;;  %p614_p13 = scmp.lt.s32.totalorder %s1448_s18, 511 }
  0xe8   : > { %s1179_s19 = smov [#allocation3 + $0x5]   ;;  %s266_s27 = sadd.s32 6, %s1247_s25 }
  0xe9   : > { %s262_s0 = sshll.u32 %s1179_s19, 4  ;;  %s1673_s18 = smov (!%p232_p12, %s1448_s18), 0  ;;  %s1487_s0 = int_to_ptr.vmem [resolvable:$true] %s262_s0 }
  0xea   : > { %s1489_s30 = sld [smem:[#allocation6 + %s266_s27]]  ;;  %s1675_s18 = smov (!%p614_p13, %s1673_s18), 511 }
  0xeb   : > { %s619_s10 = sshll.u32 %s1675_s18, 4  ;;  %s1180_s21 = smov [#allocation2 + $0x6]  }
  0xec   : > { %s1491_s24 = sshll.u32 %s1180_s21, 4  ;;  %s237_s15 = scalar_lea.hbm %s1633_s1, %s619_s10  ;;  %s284_s24 = int_to_ptr.vmem [resolvable:$true] %s1491_s24 }
  0xed   : > { %s1499_s8 = scalar_lea.hbm %s1634_s2, %s619_s10  ;;  %s947_s14 = scalar_lea.hbm %s237_s15, 16 }
  0xee   : > { %p948_p0 = scmp.ne.s32.totalorder %s237_s15, %s947_s14  ;;  %p950_p1 = scmp.lt.s32.totalorder %s237_s15, %s1633_s1 }
  0xef   : > { %p951_p2 = scmp.lt.s32.totalorder %s1278_s7, %s947_s14 }
  0xf1   : > { %p952_p3 = por %p951_p2, %p950_p1 }
  0xf3   : > { %p953_p5 = pnand %p952_p3, %p948_p0 }
  0xf5   : > { %956 = shalt.err (!%p953_p5)  }
  0xf6   : > { %s957_s18 = scalar_lea.vmem %s1481_s6, 16  ;;  %p962_p8 = scmp.lt.s32.totalorder %s1481_s6, %s1254_s29 }
  0xf7   : > { %p958_p7 = scmp.ne.s32.totalorder %s1481_s6, %s957_s18  ;;  %p963_p9 = scmp.lt.s32.totalorder %s1287_s12, %s957_s18 }
  0xf9   : > { %p964_p10 = por %p963_p9, %p962_p8 }
  0xfb   : > { %p965_p11 = pnand %p964_p10, %p958_p7 }
  0xfd   : > { %968 = shalt.err (!%p965_p11)  }
  0xfe   : > { %250 = dma.hbm_to_vmem [thread:$0]  %s237_s15, 16, %s1481_s6, [#allocation4 + $0x5] }
  0xff   : > { %s969_s27 = scalar_lea.hbm %s1499_s8, 16  ;;  %p972_p13 = scmp.lt.s32.totalorder %s1499_s8, %s1634_s2 }
 0x100   : > { %p970_p12 = scmp.ne.s32.totalorder %s1499_s8, %s969_s27  ;;  %p973_p0 = scmp.lt.s32.totalorder %s1298_s28, %s969_s27 }
 0x102   : > { %p974_p1 = por %p973_p0, %p972_p13 }
 0x104   : > { %p975_p2 = pnand %p974_p1, %p970_p12 }
 0x106   : > { %978 = shalt.err (!%p975_p2)  }
 0x107   : > { %s979_s5 = scalar_lea.vmem %s1487_s0, 16  ;;  %p984_p5 = scmp.lt.s32.totalorder %s1487_s0, %s1256_s4 }
 0x108   : > { %p980_p3 = scmp.ne.s32.totalorder %s1487_s0, %s979_s5  ;;  %p985_p7 = scmp.lt.s32.totalorder %s1308_s9, %s979_s5 }
 0x10a   : > { %p986_p8 = por %p985_p7, %p984_p5 }
 0x10c   : > { %p987_p9 = pnand %p986_p8, %p980_p3 }
 0x10e   : > { %990 = shalt.err (!%p987_p9)  }
 0x10f   : > { %265 = dma.hbm_to_vmem [thread:$0]  %s1499_s8, 16, %s1487_s0, [#allocation4 + $0xd] }
 0x110   : > { %p268_p10 = scmp.gt.s32.totalorder %s1489_s30, 0  ;;  %p621_p11 = scmp.lt.s32.totalorder %s1489_s30, 511 }
 0x111   : > { %s1181_s6 = smov [#allocation3 + $0x6]   ;;  %s302_s15 = sadd.s32 7, %s1247_s25 }
 0x112   : > { %s298_s13 = sshll.u32 %s1181_s6, 4  ;;  %s1677_s30 = smov (!%p268_p10, %s1489_s30), 0  ;;  %s1530_s13 = int_to_ptr.vmem [resolvable:$true] %s298_s13 }
 0x113   : > { %s1679_s30 = smov (!%p621_p11, %s1677_s30), 511  ;;  %s1532_s20 = sld [smem:[#allocation6 + %s302_s15]] }
 0x114   : > { %s626_s11 = sshll.u32 %s1679_s30, 4 }
 0x115   : > { %s273_s19 = scalar_lea.hbm %s1633_s1, %s626_s11  ;;  %s1540_s8 = scalar_lea.hbm %s1634_s2, %s626_s11 }
 0x116   : > { %s991_s27 = scalar_lea.hbm %s273_s19, 16  ;;  %p994_p13 = scmp.lt.s32.totalorder %s273_s19, %s1633_s1 }
 0x117   : > { %p992_p12 = scmp.ne.s32.totalorder %s273_s19, %s991_s27  ;;  %p995_p0 = scmp.lt.s32.totalorder %s1278_s7, %s991_s27 }
 0x119   : > { %p996_p1 = por %p995_p0, %p994_p13 }
 0x11b   : > { %p997_p2 = pnand %p996_p1, %p992_p12 }
 0x11d   : > { %1000 = shalt.err (!%p997_p2)  }
 0x11e   : > { %s1001_s25 = scalar_lea.vmem %s284_s24, 16  ;;  %p1006_p5 = scmp.lt.s32.totalorder %s284_s24, %s1254_s29 }
 0x11f   : > { %p1002_p3 = scmp.ne.s32.totalorder %s284_s24, %s1001_s25  ;;  %p1007_p7 = scmp.lt.s32.totalorder %s1287_s12, %s1001_s25 }
 0x121   : > { %p1008_p8 = por %p1007_p7, %p1006_p5 }
 0x123   : > { %p1009_p9 = pnand %p1008_p8, %p1002_p3 }
 0x125   : > { %1012 = shalt.err (!%p1009_p9)  }
 0x126   : > { %286 = dma.hbm_to_vmem [thread:$0]  %s273_s19, 16, %s284_s24, [#allocation4 + $0x6] }
 0x127   : > { %s1013_s30 = scalar_lea.hbm %s1540_s8, 16  ;;  %p1016_p11 = scmp.lt.s32.totalorder %s1540_s8, %s1634_s2 }
 0x128   : > { %p1014_p10 = scmp.ne.s32.totalorder %s1540_s8, %s1013_s30  ;;  %p1017_p12 = scmp.lt.s32.totalorder %s1298_s28, %s1013_s30 }
 0x12a   : > { %p1018_p13 = por %p1017_p12, %p1016_p11 }
 0x12c   : > { %p1019_p0 = pnand %p1018_p13, %p1014_p10 }
 0x12e   : > { %1022 = shalt.err (!%p1019_p0)  }
 0x12f   : > { %s1023_s24 = scalar_lea.vmem %s1530_s13, 16  ;;  %p1028_p2 = scmp.lt.s32.totalorder %s1530_s13, %s1256_s4 }
 0x130   : > { %p1024_p1 = scmp.ne.s32.totalorder %s1530_s13, %s1023_s24  ;;  %p1029_p3 = scmp.lt.s32.totalorder %s1308_s9, %s1023_s24 }
 0x132   : > { %p1030_p5 = por %p1029_p3, %p1028_p2 }
 0x134   : > { %p1031_p7 = pnand %p1030_p5, %p1024_p1 }
 0x136   : > { %1034 = shalt.err (!%p1031_p7)  }
 0x137   : > { %301 = dma.hbm_to_vmem [thread:$0]  %s1540_s8, 16, %s1530_s13, [#allocation4 + $0xe] }
 0x138   : > { %p304_p8 = scmp.gt.s32.totalorder %s1532_s20, 0  ;;  %p628_p9 = scmp.lt.s32.totalorder %s1532_s20, 511 }
 0x139   : > { %s1182_s15 = smov [#allocation2 + $0x7]   ;;  %s1183_s14 = smov [#allocation3 + $0x7]  }
 0x13a   : > { %s319_s11 = sshll.u32 %s1182_s15, 4  ;;  %s1681_s20 = smov (!%p304_p8, %s1532_s20), 0  ;;  %s320_s11 = int_to_ptr.vmem [resolvable:$true] %s319_s11 }
 0x13b   : > { %s334_s23 = sshll.u32 %s1183_s14, 4  ;;  %s1683_s20 = smov (!%p628_p9, %s1681_s20), 511  ;;  %s1565_s23 = int_to_ptr.vmem [resolvable:$true] %s334_s23 }
 0x13c   : > { %s633_s19 = sshll.u32 %s1683_s20, 4 }
 0x13d   : > { %s309_s27 = scalar_lea.hbm %s1633_s1, %s633_s19  ;;  %s1573_s13 = scalar_lea.hbm %s1634_s2, %s633_s19 }
 0x13e   : > { %s1035_s8 = scalar_lea.hbm %s309_s27, 16  ;;  %p1038_p11 = scmp.lt.s32.totalorder %s309_s27, %s1633_s1 }
 0x13f   : > { %p1036_p10 = scmp.ne.s32.totalorder %s309_s27, %s1035_s8  ;;  %p1039_p12 = scmp.lt.s32.totalorder %s1278_s7, %s1035_s8 }
 0x141   : > { %p1040_p13 = por %p1039_p12, %p1038_p11 }
 0x143   : > { %p1041_p0 = pnand %p1040_p13, %p1036_p10 }
 0x145   : > { %1044 = shalt.err (!%p1041_p0)  }
 0x146   : > { %s1045_s20 = scalar_lea.vmem %s320_s11, 16  ;;  %p1050_p2 = scmp.lt.s32.totalorder %s320_s11, %s1254_s29 }
 0x147   : > { %p1046_p1 = scmp.ne.s32.totalorder %s320_s11, %s1045_s20  ;;  %p1051_p3 = scmp.lt.s32.totalorder %s1287_s12, %s1045_s20 }
 0x149   : > { %p1052_p5 = por %p1051_p3, %p1050_p2 }
 0x14b   : > { %p1053_p7 = pnand %p1052_p5, %p1046_p1 }
 0x14d   : > { %1056 = shalt.err (!%p1053_p7)  }
 0x14e   : > { %322 = dma.hbm_to_vmem [thread:$0]  %s309_s27, 16, %s320_s11, [#allocation4 + $0x7] }
 0x14f   : > { %s1057_s5 = scalar_lea.hbm %s1573_s13, 16  ;;  %p1060_p9 = scmp.lt.s32.totalorder %s1573_s13, %s1634_s2 }
 0x150   : > { %p1058_p8 = scmp.ne.s32.totalorder %s1573_s13, %s1057_s5  ;;  %p1061_p10 = scmp.lt.s32.totalorder %s1298_s28, %s1057_s5 }
 0x152   : > { %p1062_p11 = por %p1061_p10, %p1060_p9 }
 0x154   : > { %p1063_p12 = pnand %p1062_p11, %p1058_p8 }
 0x156   : > { %1066 = shalt.err (!%p1063_p12)  }
 0x157   : > { %s1067_s29 = scalar_lea.vmem %s1565_s23, 16  ;;  %p1072_p0 = scmp.lt.s32.totalorder %s1565_s23, %s1256_s4 }
 0x158   : > { %p1068_p13 = scmp.ne.s32.totalorder %s1565_s23, %s1067_s29  ;;  %p1073_p1 = scmp.lt.s32.totalorder %s1308_s9, %s1067_s29 }
 0x15a   : > { %p1074_p2 = por %p1073_p1, %p1072_p0 }
 0x15c   : > { %p1075_p3 = pnand %p1074_p2, %p1068_p13 }
 0x15e   : > { %1078 = shalt.err (!%p1075_p3)  }
 0x15f   : > { %337 = dma.hbm_to_vmem [thread:$0]  %s1573_s13, 16, %s1565_s23, [#allocation4 + $0xf] }
 0x160   : > { %s52_s12 = scalar_lea.vmem [#allocation7], %s1251_s26 }
 0x161   : > { %1119 = dma.done.wait [#allocation4], 16 }
 0x162   : > { %1120 = vsyncadd [#allocation4], 4294967280 }
 0x163   : > { %1121 = dma.done.wait [#allocation4 + $0x8], 16 }
 0x164   : > { %1122 = vsyncadd [#allocation4 + $0x8], 4294967280 }
 0x165   : > { %1123 = dma.done.wait [#allocation4 + $0x1], 16 }
 0x166   : > { %1124 = vsyncadd [#allocation4 + $0x1], 4294967280 }
 0x167   : > { %1125 = dma.done.wait [#allocation4 + $0x9], 16 }
 0x168   : > { %1126 = vsyncadd [#allocation4 + $0x9], 4294967280 }
 0x169   : > { %1127 = dma.done.wait [#allocation4 + $0x2], 16 }
 0x16a   : > { %1128 = vsyncadd [#allocation4 + $0x2], 4294967280 }
 0x16b   : > { %1129 = dma.done.wait [#allocation4 + $0xa], 16 }
 0x16c   : > { %1130 = vsyncadd [#allocation4 + $0xa], 4294967280 }
 0x16d   : > { %1131 = dma.done.wait [#allocation4 + $0x3], 16 }
 0x16e   : > { %1132 = vsyncadd [#allocation4 + $0x3], 4294967280 }
 0x16f   : > { %1133 = dma.done.wait [#allocation4 + $0xb], 16 }
 0x170   : > { %1134 = vsyncadd [#allocation4 + $0xb], 4294967280 }
 0x171   : > { %1135 = dma.done.wait [#allocation4 + $0x4], 16 }
 0x172   : > { %1136 = vsyncadd [#allocation4 + $0x4], 4294967280 }
 0x173   : > { %1137 = dma.done.wait [#allocation4 + $0xc], 16 }
 0x174   : > { %1138 = vsyncadd [#allocation4 + $0xc], 4294967280 }
 0x175   : > { %1139 = dma.done.wait [#allocation4 + $0x5], 16 }
 0x176   : > { %1140 = vsyncadd [#allocation4 + $0x5], 4294967280 }
 0x177   : > { %1141 = dma.done.wait [#allocation4 + $0xd], 16 }
 0x178   : > { %1142 = vsyncadd [#allocation4 + $0xd], 4294967280 }
 0x179   : > { %1143 = dma.done.wait [#allocation4 + $0x6], 16 }
 0x17a   : > { %1144 = vsyncadd [#allocation4 + $0x6], 4294967280 }
 0x17b   : > { %1145 = dma.done.wait [#allocation4 + $0xe], 16 }
 0x17c   : > { %1146 = vsyncadd [#allocation4 + $0xe], 4294967280 }
 0x17d   : > { %1147 = dma.done.wait [#allocation4 + $0x7], 16 }
 0x17e   : > { %1148 = vsyncadd [#allocation4 + $0x7], 4294967280 }
 0x17f   : > { %1149 = dma.done.wait [#allocation4 + $0xf], 16 }
 0x180   : > { %1150 = vsyncadd [#allocation4 + $0xf], 4294967280  ;;  %s636_s4 = sshll.u32 %s1165_s17, 7  ;;  %s388_s28 = sshll.u32 %s52_s12, 4  ;;  %v370_v0 = vld [vmem:[#allocation2] sm:$0xff]  ;;  %v371_v1 = vld [vmem:[#allocation3] sm:$0xff]  ;;  %s389_s28 = int_to_ptr.vmem [resolvable:$true] %s388_s28 }
 0x181   : > { %v372_v2 = vadd.f32 %v371_v1, %v370_v0  ;;  %s386_s15 = scalar_lea.hbm %s1635_s3, %s636_s4  ;;  %s1647_s11 = sand.u32 1, %s1161_s16  }
 0x182   : > { %s375_s14 = scalar_lea.sflag [#allocation8], %s1647_s11  ;;  %s1079_s23 = scalar_lea.vmem %s389_s28, 128 }
 0x183   : > { %373 = vst [vmem:[%s52_s12] sm:$0xff] %v372_v2  ;;  %p1080_p5 = scmp.ne.s32.totalorder %s389_s28, %s1079_s23  ;;  %s1184_s19 = smov [#allocation7]  }
 0x184   : > { %s1083_s18 = sshll.u32 %s1184_s19, 4  ;;  %s1084_s18 = int_to_ptr.vmem [resolvable:$false] %s1083_s18 }
 0x185   : > { %p1081_p7 = pnand %p1080_p5, %p1236_p4  ;;  %s1085_s0 = scalar_lea.vmem %s1084_s18, 256 }
 0x186   : > { %p1086_p9 = scmp.lt.s32.totalorder %s389_s28, %s1084_s18  ;;  %p1087_p10 = scmp.lt.s32.totalorder %s1085_s0, %s1079_s23 }
 0x187   : > { %p1082_p8 = pneg %p1081_p7 }
 0x188   : > { %p1088_p11 = por %p1087_p10, %p1086_p9 }
 0x18a   : > { %p1089_p12 = pnand %p1088_p11, %p1082_p8 }
 0x18c   : > { %1092 = shalt.err (!%p1089_p12)
}
 0x18d   : > { %s1093_s27 = scalar_lea.hbm %s386_s15, 128  ;;  %s1097_s21 = scalar_lea.hbm %s1635_s3, 256 }
 0x18e   : > { %p1094_p13 = scmp.ne.s32.totalorder %s386_s15, %s1093_s27  ;;  %p1098_p2 = scmp.lt.s32.totalorder %s386_s15, %s1635_s3 }
 0x18f   : > { %p1099_p3 = scmp.lt.s32.totalorder %s1097_s21, %s1093_s27 }
 0x190   : > { %p1095_p0 = pnand %p1094_p13, %p1236_p4 }
 0x191   : > { %p1100_p5 = por %p1099_p3, %p1098_p2 }
 0x192   : > { %p1096_p1 = pneg %p1095_p0 }
 0x194   : > { %p1101_p7 = pnand %p1100_p5, %p1096_p1 }
 0x196   : > { %1104 = shalt.err (!%p1101_p7)
}
 0x197   : > { %671 = dma.vmem_to_hbm [thread:$0]  (%p1236_p4), %s389_s28, 128, %s386_s15, %s375_s14  }
 0x198 PF: > { %s1648_s25 = sld [smem:[#allocation61_spill]]  ;;  %p677_p8 = scmp.ge.s32.totalorder %s1165_s17, 1 }
 0x19a   : > { %p674_p9 = pnand %p677_p8, %p1240_p6 }
 0x19c   : > { %p675_p10 = pneg %p674_p9 }
 0x19e   : > { %s400_s20 = sand.u32 1, %s1648_s25  }
 0x19f   : > { %s401_s5 = scalar_lea.sflag [#allocation8], %s400_s20 }
 0x1a0   : > { %1152 = dma.done.wait (%p675_p10), %s401_s5, 128  }
 0x1a1   : > { %1154 = vsyncadd (%p675_p10), %s401_s5, 4294967168  ;;  %s1650_s17 = sld [smem:[#allocation62_spill]]  ;;  %s1652_s15 = smov %s1161_s16 }
 0x1a2   : > { %s1651_s7 = sld [smem:[#allocation63_spill]] }
 0x1a7   : > { %p17_p11 = scmp.ge.s32.totalorder %s1650_s17, 3  }
 0x1a8   : > { %s1653_s16 = smov %s1651_s7 }
 0x1a9   :  { %19 = sbr.rel (!%p17_p11) target bundleno = 8 (0x8), region = 168 }
 0x1ae   :  { %406 = vsyncpa [#allocation8], 1 }
 0x1af   :  { %408 = vsyncpa [#allocation8 + $0x1], 1 }
 0x1b0   :  { %409 = vsyncmov [#allocation4] }
 0x1b3   :  { %s410_s22 = vpop.sfrf %409 }
 0x1b4   :  { %p639_p4 = scmp.ne.s32.totalorder %s410_s22, 0 }
 0x1b6   :  { %414 = shalt.err (%p639_p4)  }
 0x1b7   :  { %416 = vsyncmov [#allocation4 + $0x1] }
 0x1ba   :  { %s417_s6 = vpop.sfrf %416 }
 0x1bb   :  { %p640_p6 = scmp.ne.s32.totalorder %s417_s6, 0 }
 0x1bd   :  { %421 = shalt.err (%p640_p6)  }
 0x1be   :  { %423 = vsyncmov [#allocation4 + $0x2] }
 0x1c1   :  { %s424_s29 = vpop.sfrf %423 }
 0x1c2   :  { %p641_p12 = scmp.ne.s32.totalorder %s424_s29, 0 }
 0x1c4   :  { %428 = shalt.err (%p641_p12)  }
 0x1c5   :  { %430 = vsyncmov [#allocation4 + $0x3] }
 0x1c8   :  { %s431_s12 = vpop.sfrf %430 }
 0x1c9   :  { %p642_p13 = scmp.ne.s32.totalorder %s431_s12, 0 }
 0x1cb   :  { %435 = shalt.err (%p642_p13)  }
 0x1cc   :  { %437 = vsyncmov [#allocation4 + $0x4] }
 0x1cf   :  { %s438_s17 = vpop.sfrf %437 }
 0x1d0   :  { %p643_p0 = scmp.ne.s32.totalorder %s438_s17, 0 }
 0x1d2   :  { %442 = shalt.err (%p643_p0)  }
 0x1d3   :  { %444 = vsyncmov [#allocation4 + $0x5] }
 0x1d6   :  { %s445_s1 = vpop.sfrf %444 }
 0x1d7   :  { %p644_p1 = scmp.ne.s32.totalorder %s445_s1, 0 }
 0x1d9   :  { %449 = shalt.err (%p644_p1)  }
 0x1da   :  { %451 = vsyncmov [#allocation4 + $0x6] }
 0x1dd   :  { %s452_s2 = vpop.sfrf %451 }
 0x1de   :  { %p645_p2 = scmp.ne.s32.totalorder %s452_s2, 0 }
 0x1e0   :  { %456 = shalt.err (%p645_p2)  }
 0x1e1   :  { %458 = vsyncmov [#allocation4 + $0x7] }
 0x1e4   :  { %s459_s3 = vpop.sfrf %458 }
 0x1e5   :  { %p646_p3 = scmp.ne.s32.totalorder %s459_s3, 0 }
 0x1e7   :  { %463 = shalt.err (%p646_p3)  }
 0x1e8   :  { %465 = vsyncmov [#allocation4 + $0x8] }
 0x1eb   :  { %s466_s16 = vpop.sfrf %465 }
 0x1ec   :  { %p647_p5 = scmp.ne.s32.totalorder %s466_s16, 0 }
 0x1ee   :  { %470 = shalt.err (%p647_p5)  }
 0x1ef   :  { %472 = vsyncmov [#allocation4 + $0x9] }
 0x1f2   :  { %s473_s4 = vpop.sfrf %472 }
 0x1f3   :  { %p648_p7 = scmp.ne.s32.totalorder %s473_s4, 0 }
 0x1f5   :  { %477 = shalt.err (%p648_p7)  }
 0x1f6   :  { %479 = vsyncmov [#allocation4 + $0xa] }
 0x1f9   :  { %s480_s28 = vpop.sfrf %479 }
 0x1fa   :  { %p649_p8 = scmp.ne.s32.totalorder %s480_s28, 0 }
 0x1fc   :  { %484 = shalt.err (%p649_p8)  }
 0x1fd   :  { %486 = vsyncmov [#allocation4 + $0xb] }
 0x200   :  { %s487_s9 = vpop.sfrf %486 }
 0x201   :  { %p650_p9 = scmp.ne.s32.totalorder %s487_s9, 0 }
 0x203   :  { %491 = shalt.err (%p650_p9)  }
 0x204   :  { %493 = vsyncmov [#allocation4 + $0xc] }
 0x207   :  { %s494_s24 = vpop.sfrf %493 }
 0x208   :  { %p651_p10 = scmp.ne.s32.totalorder %s494_s24, 0 }
 0x20a   :  { %498 = shalt.err (%p651_p10)  }
 0x20b   :  { %500 = vsyncmov [#allocation4 + $0xd] }
 0x20e   :  { %s501_s15 = vpop.sfrf %500 }
 0x20f   :  { %p652_p11 = scmp.ne.s32.totalorder %s501_s15, 0 }
 0x211   :  { %505 = shalt.err (%p652_p11)  }
 0x212   :  { %507 = vsyncmov [#allocation4 + $0xe] }
 0x215   :  { %s508_s11 = vpop.sfrf %507 }
 0x216   :  { %p653_p4 = scmp.ne.s32.totalorder %s508_s11, 0 }
 0x218   :  { %512 = shalt.err (%p653_p4)  }
 0x219   :  { %514 = vsyncmov [#allocation4 + $0xf] }
 0x21c   :  { %s515_s14 = vpop.sfrf %514 }
 0x21d   :  { %p654_p6 = scmp.ne.s32.totalorder %s515_s14, 0 }
 0x21f   :  { %519 = shalt.err (%p654_p6)  }

</bundles_post_ra>
